<compile_context>
chip_gen: v5e
topology: v5e:2x2
jax: 0.10.0
libtpu: 0.0.40
codegen_flags: <defaults>
</compile_context>

<pallas_src>
import jax
import jax.numpy as jnp
from jax.experimental import pallas as pl
from jax.experimental.pallas import tpu as pltpu


def sol_eq_kernel(xy_ref, o_ref):
    # xy_ref block: (2, rows_block, lanes); split coords inside the kernel.
    x = xy_ref[0].astype(jnp.float32)
    y = xy_ref[1].astype(jnp.float32)
    # Shared subexpression: r = x^2 + y^2
    #   (x-2)^2 + y^2 = r - 4x + 4
    #   x^2 + (y-3)^2 = r - 6y + 9
    r = x * x + y * y
    out = jnp.sin(r - 4.0 * x + 4.0) + jnp.sin(r - 6.0 * y + 9.0)
    o_ref[...] = out.astype(o_ref.dtype)


def _round_up(a, b):
    return ((a + b - 1) // b) * b


def sol_eq(x_eq, *, lanes=512, max_rows_per_block=1024):
    """x_eq: (B, N, 2) float array. Returns (B, N, 1), same dtype as input."""
    B, N, C = x_eq.shape
    assert C == 2, "Sol_Eq expects last dim of size 2 (x, y coords)"
    out_dtype = x_eq.dtype

    total = B * N
    # One de-interleave pass: (B, N, 2) -> (2, B*N).
    coords = jnp.moveaxis(x_eq, -1, 0).reshape(2, total)

    # Pack into a lane-dense, sublane-full 2D slab: (2, rows_padded, lanes).
    rows = -(-total // lanes)  # ceil
    if rows >= max_rows_per_block:
        rows_block = max_rows_per_block
    else:
        rows_block = _round_up(rows, 8)
    rows_padded = _round_up(rows, rows_block)
    padded_total = rows_padded * lanes
    if padded_total != total:
        coords = jnp.pad(coords, ((0, 0), (0, padded_total - total)))
    coords = coords.reshape(2, rows_padded, lanes)

    grid = (rows_padded // rows_block,)

    out2d = pl.pallas_call(
        sol_eq_kernel,
        out_shape=jax.ShapeDtypeStruct((rows_padded, lanes), out_dtype),
        grid=grid,
        in_specs=[
            pl.BlockSpec((2, rows_block, lanes), lambda i: (0, i, 0)),
        ],
        out_specs=pl.BlockSpec((rows_block, lanes), lambda i: (i, 0)),
        compiler_params=pltpu.CompilerParams(
            dimension_semantics=("parallel",)
        ),
    )(coords)

    # Strip padding and restore the PyTorch (B, N, 1) shape.
    return out2d.reshape(-1)[:total].reshape(B, N, 1)


def sol_eq_ref(x_eq):
    x = x_eq[:, :, 0:1].astype(jnp.float32)
    y = x_eq[:, :, 1:2].astype(jnp.float32)
    out = jnp.sin((x - 2.0) ** 2 + y ** 2) + jnp.sin(x ** 2 + (y - 3.0) ** 2)
    return out.astype(x_eq.dtype)


if __name__ == "__main__":
    key = jax.random.PRNGKey(0)

    # Test 1: shape matching the original module's usage (single grid block).
    B, N = 2, 256
    x_eq = jax.random.normal(key, (B, N, 2), dtype=jnp.float32)
    out = jax.block_until_ready(sol_eq(x_eq))
    ref = sol_eq_ref(x_eq)
    assert out.shape == (B, N, 1), out.shape
    # atol slightly looser than exact-form comparison: kernel uses the
    # algebraically expanded sin arguments (r - 4x + 4, r - 6y + 9).
    assert jnp.allclose(out, ref, atol=1e-4, rtol=1e-5), "mismatch vs reference (test 1)"

    # Test 2: non-multiple sizes + forced multi-block grid (exercises padding
    # and the parallel grid path) while keeping shapes small.
    key2 = jax.random.PRNGKey(1)
    B2, N2 = 3, 1000
    x_eq2 = jax.random.normal(key2, (B2, N2, 2), dtype=jnp.float32)
    out2 = jax.block_until_ready(sol_eq(x_eq2, lanes=128, max_rows_per_block=8))
    ref2 = sol_eq_ref(x_eq2)
    assert out2.shape == (B2, N2, 1), out2.shape
    assert jnp.allclose(out2, ref2, atol=1e-4, rtol=1e-5), "mismatch vs reference (test 2)"

    print("KERNEL_OK")
</pallas_src>

<mosaic_0001>
module attributes {stable_mosaic.version = 11 : i64} {
  func.func @sol_eq_kernel(%arg0: i32, %arg1: memref<2x8x512xf32, #tpu.memory_space<vmem>>, %arg2: memref<8x512xf32, #tpu.memory_space<vmem>>) attributes {dimension_semantics = [#tpu.dimension_semantics<parallel>], iteration_bounds = array<i64: 1>, scalar_prefetch = 0 : i64, scratch_operands = 0 : i64, tpu.core_type = #tpu.core_type<tc>, window_params = [{transform_indices = @transform_0, window_bounds = array<i64: 2, 8, 512>}, {transform_indices = @transform_1, window_bounds = array<i64: 8, 512>}]} {
    %c0 = arith.constant 0 : index
    %c0_0 = arith.constant 0 : index
    %c0_1 = arith.constant 0 : index
    %0 = vector.load %arg1[%c0, %c0_0, %c0_1] : memref<2x8x512xf32, #tpu.memory_space<vmem>>, vector<1x8x512xf32>
    %1 = vector.shape_cast %0 : vector<1x8x512xf32> to vector<8x512xf32>
    %c1 = arith.constant 1 : index
    %c0_2 = arith.constant 0 : index
    %c0_3 = arith.constant 0 : index
    %2 = vector.load %arg1[%c1, %c0_2, %c0_3] : memref<2x8x512xf32, #tpu.memory_space<vmem>>, vector<1x8x512xf32>
    %3 = vector.shape_cast %2 : vector<1x8x512xf32> to vector<8x512xf32>
    %4 = arith.mulf %1, %1 : vector<8x512xf32>
    %5 = arith.mulf %3, %3 : vector<8x512xf32>
    %6 = arith.addf %4, %5 : vector<8x512xf32>
    %cst = arith.constant 4.000000e+00 : f32
    %7 = vector.broadcast %cst : f32 to vector<8x512xf32>
    %8 = arith.mulf %7, %1 : vector<8x512xf32>
    %9 = arith.subf %6, %8 : vector<8x512xf32>
    %cst_4 = arith.constant 4.000000e+00 : f32
    %10 = vector.broadcast %cst_4 : f32 to vector<8x512xf32>
    %11 = arith.addf %9, %10 : vector<8x512xf32>
    %12 = math.sin %11 : vector<8x512xf32>
    %cst_5 = arith.constant 6.000000e+00 : f32
    %13 = vector.broadcast %cst_5 : f32 to vector<8x512xf32>
    %14 = arith.mulf %13, %3 : vector<8x512xf32>
    %15 = arith.subf %6, %14 : vector<8x512xf32>
    %cst_6 = arith.constant 9.000000e+00 : f32
    %16 = vector.broadcast %cst_6 : f32 to vector<8x512xf32>
    %17 = arith.addf %15, %16 : vector<8x512xf32>
    %18 = math.sin %17 : vector<8x512xf32>
    %19 = arith.addf %12, %18 : vector<8x512xf32>
    %c0_7 = arith.constant 0 : index
    %c0_8 = arith.constant 0 : index
    %20 = vector.load %arg2[%c0_7, %c0_8] : memref<8x512xf32, #tpu.memory_space<vmem>>, vector<8x512xf32>
    tpu.vector_store %arg2[%c0_7, %c0_8], %19 {strides = array<i32>} : memref<8x512xf32, #tpu.memory_space<vmem>>, vector<8x512xf32>,
    return
  }
  func.func @transform_0(%arg0: i32) -> (i32, i32, i32) {
    %c0_i32 = arith.constant 0 : i32
    %c0_i32_0 = arith.constant 0 : i32
    %c0_i32_1 = arith.constant 0 : i32
    return %c0_i32, %arg0, %c0_i32_0 : i32, i32, i32
  }
  func.func @transform_1(%arg0: i32) -> (i32, i32) {
    %c0_i32 = arith.constant 0 : i32
    %c0_i32_0 = arith.constant 0 : i32
    return %arg0, %c0_i32 : i32, i32
  }
}

</mosaic_0001>

<bundles_post_ra>
// kernel: tpu_custom_call.1
= control target key start
LH: loop header
LB: loop body
LE: loop exit
PB: predicated region body
PF: predicated region fallthrough
CT: control target
= control target key end

     0   :  { %6 = vsyncpa [#allocation3], 0  ;;  %s2678_s0 = inlined_call_operand.hbm [shape: f32[2,8,512], index: 0, kind: input, shape index: {}]   ;;  %s2679_s1 = inlined_call_operand.hbm [shape: f32[8,512], index: 1, kind: output, shape index: {}]  }
   0x1   :  { %7 = vsyncpa [#allocation4], 0  ;;  %s12_s8 = sshll.u32 %s2678_s0, 4  ;;  %s1423_s9 = smov [#allocation2]   ;;  %s13_s8 = int_to_ptr.hbm [resolvable:$true] %s12_s8 }
   0x2   :  { %s14_s10 = sshll.u32 %s1423_s9, 4  ;;  %s1424_s11 = smov 512   ;;  %s15_s10 = int_to_ptr.vmem [resolvable:$true] %s14_s10 }
   0x3   :  { %s1425_s12 = smov 32  }
   0x4   :  { %20 = dma.hbm_to_vmem [thread:$0]  %s13_s8, 1024, %s15_s10, [#allocation3], %s1424_s11, %s1424_s11, %s1425_s12  }
   0x5   :  { %1419 = dma.done.wait [#allocation3], 1024  }
   0x6   :  { %1420 = vsyncadd [#allocation3], 4294966272  ;;  %v25_v0 = vld [vmem:[#allocation2] sm:$0xff]  ;;  %v26_v1 = vld [vmem:[#allocation2 + $0x8] sm:$0xff]  ;;  %v2689_v49 = vmov 683565275  }
   0x7   :  { %v27_v2 = vld [vmem:[#allocation2 + $0x10] sm:$0xff]  ;;  %v1447_v3 = vld [vmem:[#allocation2 + $0x20] sm:$0xff]  ;;  %v1449_v4 = vld [vmem:[#allocation2 + $0x28] sm:$0xff]  ;;  %v34_v5 = vmul.f32 %v25_v0, %v25_v0  ;;  %v35_v6 = vmul.f32 %v26_v1, %v26_v1  ;;  %v46_v11 = vmul.f32 4.0, %v25_v0  ;;  %v47_v12 = vmul.f32 4.0, %v26_v1  ;;  %s1433_s0 = smov [#allocation5]  }
   0x8   :  { %v36_v7 = vmul.f32 %v27_v2, %v27_v2  ;;  %v32_v8 = vld [vmem:[#allocation2 + $0x30] sm:$0xff]  ;;  %v38_v9 = vmul.f32 %v1447_v3, %v1447_v3  ;;  %v39_v10 = vmul.f32 %v1449_v4, %v1449_v4  ;;  %v48_v14 = vmul.f32 4.0, %v27_v2  ;;  %s1323_s13 = sshll.u32 %s1433_s0, 4  ;;  %s1325_s16 = sshll.u32 %s2679_s1, 4  ;;  %s1324_s13 = int_to_ptr.vmem [resolvable:$true] %s1323_s13  ;;  %s1326_s16 = int_to_ptr.hbm [resolvable:$true] %s1325_s16 }
   0x9   :  { %v40_v13 = vmul.f32 %v32_v8, %v32_v8  ;;  %v2685_v51 = vmov 2475754826   ;;  %v2683_v53 = vmov 2131351028   ;;  %v2687_v55 = vmov 2102212464  }
   0xa   :  { %v1455_v15 = vadd.f32 %v38_v9, %v34_v5  ;;  %v1457_v16 = vadd.f32 %v39_v10, %v35_v6  ;;  %v2696_v57 = vmov 920167782   ;;  %v2695_v2 = vmov 1326507024  }
   0xb   :  { %v1459_v17 = vadd.f32 %v40_v13, %v36_v7 }
   0xc   :  { %v50_v18 = vsub.f32 %v1455_v15, %v46_v11  ;;  %v51_v19 = vsub.f32 %v1457_v16, %v47_v12 }
   0xd   :  { %v52_v20 = vsub.f32 %v1459_v17, %v48_v14 }
   0xe   :  { %v1464_v21 = vadd.f32 4.0, %v50_v18  ;;  %v1466_v22 = vadd.f32 4.0, %v51_v19 }
   0xf   :  { %v1468_v23 = vadd.f32 4.0, %v52_v20 }
  0x10   :  { %2701 = vst [vmem:[#allocation8_spill] sm:$0xff] %v1466_v22  ;;  %v58_v24 = vand.u32 2147483647, %v1464_v21  ;;  %v61_v25 = vand.u32 2139095040, %v1464_v21  ;;  %v213_v26 = vand.u32 2147483647, %v1466_v22 }
  0x11   :  { %v216_v27 = vand.u32 2139095040, %v1466_v22  ;;  %v371_v28 = vand.u32 2139095040, %v1468_v23 }
  0x12   :  { %v62_v29 = vshrl.u32 %v61_v25, 23  ;;  %v65_v30 = vand.u32 8388607, %v58_v24  ;;  %v220_v32 = vand.u32 8388607, %v213_v26 }
  0x13   :  { %v217_v31 = vshrl.u32 %v216_v27, 23  ;;  %v372_v36 = vshrl.u32 %v371_v28, 23 }
  0x14   :  { %v1335_v33 = vadd.s32 4294967169, %v62_v29  ;;  %v66_v34 = vor.u32 8388608, %v65_v30  ;;  %v221_v38 = vor.u32 8388608, %v220_v32 }
  0x15   :  { %v1338_v35 = vadd.s32 4294967169, %v217_v31  ;;  %v1341_v42 = vadd.s32 4294967169, %v372_v36 }
  0x16   :  { %v68_v37 = vadd.s32 1, %v1335_v33  ;;  %v1479_v41 = vshll.u32 %v66_v34, 8  ;;  %v1485_v47 = vshll.u32 %v221_v38, 8 }
  0x17   :  { %v223_v39 = vadd.s32 1, %v1338_v35  ;;  %v1493_v60 = vadd.s32 1, %v1341_v42 }
  0x18   :  { %vm69_vm0 = vcmp.gt.s32.totalorder %v68_v37, 0  ;;  %v107_v59 = vand.u32 65535, %v1479_v41  ;;  %v108_v0 = vshrl.u32 %v1479_v41, 16 }
  0x19   :  { %v70_v40 = vsel %vm69_vm0, %v68_v37, 0  ;;  %vm224_vm1 = vcmp.gt.s32.totalorder %v223_v39, 0  ;;  %vm379_vm15 = vcmp.gt.s32.totalorder %v1493_v60, 0 }
  0x1a   :  { %v72_v43 = vand.u32 31, %v70_v40  ;;  %v225_v44 = vsel %vm224_vm1, %v223_v39, 0  ;;  %v1481_v45 = vshrl.u32 %v70_v40, 5 }
  0x1b   :  { %v1483_v46 = vand.u32 31, %v225_v44  ;;  %v1513_v18 = vshrl.u32 %v225_v44, 5 }
  0x1c   :  { %v73_v48 = vsub.s32 32, %v72_v43  ;;  %v75_v50 = vshll.u32 %v2689_v49, %v72_v43  ;;  %v78_v52 = vshll.u32 %v2685_v51, %v72_v43  ;;  %v81_v54 = vshll.u32 %v2683_v53, %v72_v43 }
  0x1d   :  { %v84_v56 = vshll.u32 %v2687_v55, %v72_v43  ;;  %v87_v58 = vshll.u32 %v2696_v57, %v72_v43  ;;  %vm90_vm2 = vcmp.lt.s32.totalorder %v1481_v45, 1  ;;  %vm93_vm3 = vcmp.lt.s32.totalorder %v1481_v45, 4 }
  0x1e   :  { %v76_v61 = vshrl.u32 %v2685_v51, %v73_v48  ;;  %v79_v62 = vshrl.u32 %v2683_v53, %v73_v48  ;;  %v82_v63 = vshrl.u32 %v2687_v55, %v73_v48  ;;  %v85_v1 = vshrl.u32 %v2696_v57, %v73_v48 }
  0x1f   :  { %v88_v5 = vshrl.u32 %v2695_v2, %v73_v48  ;;  %v1504_v9 = vsub.s32 32, %v1483_v46  ;;  %v74_v10 = vshrl.u32 %v2689_v49, %v73_v48  ;;  %vm92_vm4 = vcmp.lt.s32.totalorder %v1481_v45, 3 }
  0x20   :  { %v77_v6 = vor.u32 %v76_v61, %v75_v50  ;;  %v80_v7 = vor.u32 %v79_v62, %v78_v52  ;;  %v83_v8 = vor.u32 %v82_v63, %v81_v54  ;;  %v86_v11 = vor.u32 %v85_v1, %v84_v56 }
  0x21   :  { %v89_v12 = vor.u32 %v88_v5, %v87_v58  ;;  %vm91_vm5 = vcmp.lt.s32.totalorder %v1481_v45, 2  ;;  %v230_v25 = vshll.u32 %v2689_v49, %v1483_v46  ;;  %v233_v27 = vshll.u32 %v2685_v51, %v1483_v46 }
  0x22   :  { %v98_v13 = vsel %vm90_vm2, %v77_v6, %v80_v7  ;;  %v102_v14 = vsel %vm90_vm2, %v80_v7, %v83_v8  ;;  %v99_v19 = vsel %vm93_vm3, %v86_v11, 920167782  ;;  %v95_v28 = vsel %vm93_vm3, %v83_v8, 2102212464 }
  0x23   :  { %v103_v20 = vsel %vm93_vm3, %v89_v12, 1326507024  ;;  %v100_v29 = vsel %vm92_vm4, %v83_v8, %v99_v19  ;;  %v231_v31 = vshrl.u32 %v2685_v51, %v1504_v9  ;;  %v94_v32 = vsel %vm90_vm2, %v74_v10, %v77_v6 }
  0x24   :  { %v104_v30 = vsel %vm92_vm4, %v86_v11, %v103_v20  ;;  %v101_v33 = vsel %vm91_vm5, %v98_v13, %v100_v29  ;;  %v234_v35 = vshrl.u32 %v2683_v53, %v1504_v9  ;;  %v96_v40 = vsel %vm92_vm4, %v80_v7, %v95_v28 }
  0x25   :  { %v105_v34 = vsel %vm91_vm5, %v102_v14, %v104_v30  ;;  %v131_v38 = vand.u32 65535, %v101_v33  ;;  %v132_v39 = vshrl.u32 %v101_v33, 16  ;;  %v1541_v42 = vor.u32 %v231_v31, %v230_v25 }
  0x26   :  { %v109_v36 = vand.u32 65535, %v105_v34  ;;  %v110_v37 = vshrl.u32 %v105_v34, 16  ;;  %v1543_v43 = vor.u32 %v234_v35, %v233_v27  ;;  %v236_v44 = vshll.u32 %v2683_v53, %v1483_v46 }
  0x27   :  { %v237_v54 = vshrl.u32 %v2687_v55, %v1504_v9  ;;  %v133_v58 = vmul.u32 %v131_v38, %v107_v59  ;;  %v134_v61 = vmul.u32 %v132_v39, %v107_v59  ;;  %v135_v62 = vmul.u32 %v131_v38, %v108_v0 }
  0x28   :  { %v111_v48 = vmul.u32 %v109_v36, %v107_v59  ;;  %v112_v50 = vmul.u32 %v110_v37, %v107_v59  ;;  %v113_v52 = vmul.u32 %v109_v36, %v108_v0  ;;  %v114_v56 = vmul.u32 %v110_v37, %v108_v0 }
  0x29   :  { %v136_v6 = vmul.u32 %v132_v39, %v108_v0  ;;  %v137_v8 = vshll.u32 %v134_v61, 16  ;;  %v138_v10 = vshrl.u32 %v134_v61, 16  ;;  %v139_v11 = vshll.u32 %v135_v62, 16 }
  0x2a   :  { %v115_v63 = vshll.u32 %v112_v50, 16  ;;  %v116_v1 = vshrl.u32 %v112_v50, 16  ;;  %v117_v5 = vshll.u32 %v113_v52, 16  ;;  %v118_v7 = vshrl.u32 %v113_v52, 16 }
  0x2b   :  { %v140_v13 = vshrl.u32 %v135_v62, 16  ;;  %v239_v14 = vshll.u32 %v2687_v55, %v1483_v46  ;;  %v1432_v19 = vmov 0   ;;  %vm141_vm7 = vc.u32 %v133_v58, %v137_v8 }
  0x2c   :  { %vm119_vm6 = vc.u32 %v111_v48, %v115_v63  ;;  %v121_v12 = vadd.s32 %v115_v63, %v111_v48  ;;  %v143_v59 = vadd.s32 %v137_v8, %v133_v58  ;;  %v240_v25 = vshrl.u32 %v2696_v57, %v1504_v9 }
  0x2d   :  { %v120_v20 = vsel %vm119_vm6, 1, %v1432_v19  ;;  %v142_v0 = vsel %vm141_vm7, 1, %v1432_v19  ;;  %v242_v28 = vshll.u32 %v2696_v57, %v1483_v46  ;;  %v238_v31 = vor.u32 %v237_v54, %v236_v44 }
  0x2e   :  { %v122_v27 = vadd.s32 %v120_v20, %v114_v56  ;;  %vm123_vm8 = vc.u32 %v121_v12, %v117_v5  ;;  %v144_v30 = vadd.s32 %v142_v0, %v136_v6  ;;  %vm145_vm9 = vc.u32 %v143_v59, %v139_v11 }
  0x2f   :  { %v124_v29 = vsel %vm123_vm8, 1, %v1432_v19  ;;  %v146_v34 = vsel %vm145_vm9, 1, %v1432_v19  ;;  %v241_v35 = vor.u32 %v240_v25, %v239_v14  ;;  %v243_v36 = vshrl.u32 %v2695_v2, %v1504_v9 }
  0x30   :  { %v126_v33 = vadd.s32 %v124_v29, %v122_v27  ;;  %v1561_v37 = vadd.s32 %v143_v59, %v139_v11  ;;  %v148_v38 = vadd.s32 %v146_v34, %v144_v30  ;;  %vm245_vm10 = vcmp.lt.s32.totalorder %v1513_v18, 1 }
  0x31   :  { %vm247_vm11 = vcmp.lt.s32.totalorder %v1513_v18, 3  ;;  %v244_v39 = vor.u32 %v243_v36, %v242_v28  ;;  %vm246_vm12 = vcmp.lt.s32.totalorder %v1513_v18, 2  ;;  %vm248_vm13 = vcmp.lt.s32.totalorder %v1513_v18, 4 }
  0x32   :  { %v127_v46 = vadd.s32 %v126_v33, %v116_v1  ;;  %v97_v44 = vsel %vm91_vm5, %v94_v32, %v96_v40  ;;  %v149_v48 = vadd.s32 %v148_v38, %v138_v10  ;;  %v253_v50 = vsel %vm245_vm10, %v1541_v42, %v1543_v43 }
  0x33   :  { %v254_v52 = vsel %vm248_vm13, %v241_v35, 920167782  ;;  %v257_v58 = vsel %vm245_vm10, %v1543_v43, %v238_v31  ;;  %v262_v45 = vand.u32 65535, %v1485_v47  ;;  %v258_v61 = vsel %vm248_vm13, %v244_v39, 1326507024 }
  0x34   :  { %v1575_v54 = vadd.s32 %v127_v46, %v118_v7  ;;  %v255_v56 = vsel %vm247_vm11, %v238_v31, %v254_v52  ;;  %v150_v32 = vadd.s32 %v149_v48, %v140_v13  ;;  %v263_v62 = vshrl.u32 %v1485_v47, 16 }
  0x35   :  { %v256_v40 = vsel %vm246_vm12, %v253_v50, %v255_v56  ;;  %v151_v63 = vmul.u32 %v1479_v41, %v97_v44  ;;  %v259_v1 = vsel %vm247_vm11, %v241_v35, %v258_v61  ;;  %v229_v41 = vshrl.u32 %v2689_v49, %v1504_v9 }
  0x36   :  { %vm153_vm14 = vc.u32 %v1575_v54, %v1561_v37  ;;  %v286_v5 = vand.u32 65535, %v256_v40  ;;  %v154_v6 = vadd.s32 1, %v150_v32  ;;  %v260_v7 = vsel %vm246_vm12, %v257_v58, %v259_v1 }
  0x37   :  { %v287_v8 = vshrl.u32 %v256_v40, 16  ;;  %v264_v10 = vand.u32 65535, %v260_v7  ;;  %v265_v11 = vshrl.u32 %v260_v7, 16  ;;  %v380_v29 = vsel %vm379_vm15, %v1493_v60, 0 }
  0x38   :  { %v155_v12 = vsel %vm153_vm14, %v154_v6, %v150_v32  ;;  %v290_v14 = vmul.u32 %v286_v5, %v263_v62  ;;  %v288_v27 = vmul.u32 %v286_v5, %v262_v45  ;;  %v250_v33 = vsel %vm248_vm13, %v238_v31, 2102212464 }
  0x39   :  { %v289_v13 = vmul.u32 %v287_v8, %v262_v45  ;;  %v156_v20 = vadd.s32 %v155_v12, %v151_v63  ;;  %v266_v59 = vmul.u32 %v264_v10, %v262_v45  ;;  %v267_v25 = vmul.u32 %v265_v11, %v262_v45 }
  0x3a   :  { %v268_v0 = vmul.u32 %v264_v10, %v263_v62  ;;  %v269_v34 = vmul.u32 %v265_v11, %v263_v62  ;;  %v249_v9 = vsel %vm245_vm10, %v229_v41, %v1541_v42  ;;  %v291_v38 = vmul.u32 %v287_v8, %v263_v62 }
  0x3b   :  { %v292_v28 = vshll.u32 %v289_v13, 16  ;;  %v157_v30 = vadd.s32 536870912, %v156_v20  ;;  %v270_v35 = vshll.u32 %v267_v25, 16  ;;  %v294_v46 = vshll.u32 %v290_v14, 16 }
  0x3c   :  { %v272_v36 = vshll.u32 %v268_v0, 16  ;;  %v251_v60 = vsel %vm247_vm11, %v1543_v43, %v250_v33  ;;  %v271_v52 = vshrl.u32 %v267_v25, 16  ;;  %v293_v42 = vshrl.u32 %v289_v13, 16 }
  0x3d   :  { %v1604_v39 = vshrl.u32 %v157_v30, 30  ;;  %vm274_vm0 = vc.u32 %v266_v59, %v270_v35  ;;  %v276_v44 = vadd.s32 %v270_v35, %v266_v59  ;;  %vm296_vm1 = vc.u32 %v288_v27, %v292_v28 }
  0x3e   :  { %v275_v31 = vsel %vm274_vm0, 1, %v1432_v19  ;;  %v297_v48 = vsel %vm296_vm1, 1, %v1432_v19  ;;  %v298_v50 = vadd.s32 %v292_v28, %v288_v27  ;;  %v273_v58 = vshrl.u32 %v268_v0, 16 }
  0x3f   :  { %v277_v56 = vadd.s32 %v275_v31, %v269_v34  ;;  %vm278_vm2 = vc.u32 %v276_v44, %v272_v36  ;;  %v299_v32 = vadd.s32 %v297_v48, %v291_v38  ;;  %v159_v40 = vshll.u32 %v1604_v39, 30 }
  0x40   :  { %v279_v45 = vsel %vm278_vm2, 1, %v1432_v19  ;;  %vm300_vm3 = vc.u32 %v298_v50, %v294_v46  ;;  %v382_v43 = vand.u32 31, %v380_v29  ;;  %v295_v63 = vshrl.u32 %v290_v14, 16 }
  0x41   :  { %v281_v61 = vadd.s32 %v279_v45, %v277_v56  ;;  %v301_v62 = vsel %vm300_vm3, 1, %v1432_v19  ;;  %v1614_v6 = vadd.s32 %v298_v50, %v294_v46  ;;  %v252_v7 = vsel %vm246_vm12, %v249_v9, %v251_v60 }
  0x42   :  { %v303_v1 = vadd.s32 %v301_v62, %v299_v32  ;;  %v1618_v10 = vsub.s32 %v156_v20, %v159_v40  ;;  %v1622_v12 = vsub.s32 32, %v382_v43  ;;  %v306_v13 = vmul.u32 %v1485_v47, %v252_v7 }
  0x43   :  { %v282_v5 = vadd.s32 %v281_v61, %v271_v52  ;;  %v2682_v59 = vand.u32 2147483647, %v1468_v23  ;;  %v1628_v25 = vshrl.u32 %v380_v29, 5  ;;  %v388_v20 = vshll.u32 %v2685_v51, %v382_v43 }
  0x44   :  { %v304_v8 = vadd.s32 %v303_v1, %v293_v42  ;;  %vm161_vm5 = vcmp.lt.s32.totalorder %v1618_v10, 0  ;;  %v162_v18 = vsub.s32 0, %v1618_v10  ;;  %v389_v27 = vshrl.u32 %v2683_v53, %v1622_v12  ;;  %v1674_v1 = vld [vmem:[#allocation2 + $0x38] sm:$0xff] }
  0x45   :  { %v1620_v11 = vadd.s32 %v282_v5, %v273_v58  ;;  %v391_v47 = vshll.u32 %v2683_v53, %v382_v43  ;;  %v394_v28 = vshll.u32 %v2687_v55, %v382_v43  ;;  %v395_v30 = vshrl.u32 %v2696_v57, %v1622_v12 }
  0x46   :  { %v305_v41 = vadd.s32 %v304_v8, %v295_v63  ;;  %v392_v29 = vshrl.u32 %v2687_v55, %v1622_v12  ;;  %v397_v34 = vshll.u32 %v2696_v57, %v382_v43  ;;  %v398_v35 = vshrl.u32 %v2695_v2, %v1622_v12  ;;  %v28_v63 = vld [vmem:[#allocation2 + $0x18] sm:$0xff] }
  0x47   :  { %vm308_vm4 = vc.u32 %v1620_v11, %v1614_v6  ;;  %v375_v9 = vand.u32 8388607, %v2682_v59  ;;  %v163_v36 = vsel %vm161_vm5, %v162_v18, %v1618_v10  ;;  %v385_v38 = vshll.u32 %v2689_v49, %v382_v43 }
  0x48   :  { %v309_v14 = vadd.s32 1, %v305_v41  ;;  %v386_v46 = vshrl.u32 %v2685_v51, %v1622_v12  ;;  %v1650_v44 = vor.u32 %v389_v27, %v388_v20  ;;  %v396_v60 = vor.u32 %v395_v30, %v394_v28 }
  0x49   :  { %v1652_v48 = vor.u32 %v392_v29, %v391_v47  ;;  %v399_v50 = vor.u32 %v398_v35, %v397_v34  ;;  %vm403_vm6 = vcmp.lt.s32.totalorder %v1628_v25, 4  ;;  %v164_v52 = vclz %v163_v36 }
  0x4a   :  { %v310_v0 = vsel %vm308_vm4, %v309_v14, %v305_v41  ;;  %v376_v56 = vor.u32 8388608, %v375_v9  ;;  %vm400_vm7 = vcmp.lt.s32.totalorder %v1628_v25, 1  ;;  %v1656_v42 = vor.u32 %v386_v46, %v385_v38 }
  0x4b   :  { %v311_v33 = vadd.s32 %v310_v0, %v306_v13  ;;  %vm402_vm8 = vcmp.lt.s32.totalorder %v1628_v25, 3  ;;  %vm401_vm9 = vcmp.lt.s32.totalorder %v1628_v25, 2  ;;  %v409_v58 = vsel %vm403_vm6, %v396_v60, 920167782 }
  0x4c   :  { %v412_v32 = vsel %vm400_vm7, %v1650_v44, %v1652_v48  ;;  %v413_v40 = vsel %vm403_vm6, %v399_v50, 1326507024  ;;  %v1336_v61 = vadd.s32 4294967294, %v164_v52  ;;  %v1672_v43 = vshll.u32 %v376_v56, 8 }
  0x4d   :  { %v312_v31 = vadd.s32 536870912, %v311_v33  ;;  %v414_v62 = vsel %vm402_vm8, %v396_v60, %v413_v40  ;;  %v408_v5 = vsel %vm400_vm7, %v1656_v42, %v1650_v44  ;;  %v410_v7 = vsel %vm402_vm8, %v1652_v48, %v409_v58 }
  0x4e   :  { %v415_v8 = vsel %vm401_vm9, %v412_v32, %v414_v62  ;;  %v417_v41 = vand.u32 65535, %v1672_v43  ;;  %v418_v13 = vshrl.u32 %v1672_v43, 16  ;;  %v37_v27 = vmul.f32 %v28_v63, %v28_v63 }
  0x4f   :  { %v1662_v45 = vshrl.u32 %v312_v31, 30  ;;  %v419_v14 = vand.u32 65535, %v415_v8  ;;  %v420_v20 = vshrl.u32 %v415_v8, 16  ;;  %v41_v0 = vmul.f32 %v1674_v1, %v1674_v1 }
  0x50   :  { %vm1337_vm10 = vcmp.lt.s32.totalorder %v1336_v61, 0  ;;  %v411_v47 = vsel %vm401_vm9, %v408_v5, %v410_v7  ;;  %v49_v46 = vmul.f32 4.0, %v28_v63  ;;  %vm60_vm3 = vcmp.lt.s32.totalorder %v1464_v21, 0 }
  0x51   :  { %v314_v18 = vshll.u32 %v1662_v45, 30  ;;  %v422_v28 = vmul.u32 %v420_v20, %v417_v41  ;;  %v421_v30 = vmul.u32 %v419_v14, %v417_v41  ;;  %v1692_v29 = vmul.u32 %v419_v14, %v418_v13 }
  0x52   :  { %v167_v34 = vsel %vm1337_vm10, 0, %v1336_v61  ;;  %v442_v36 = vshrl.u32 %v411_v47, 16  ;;  %v1696_v38 = vadd.f32 %v41_v0, %v37_v27  ;;  %v441_v60 = vand.u32 65535, %v411_v47 }
  0x53   :  { %v1694_v35 = vsub.s32 %v311_v33, %v314_v18  ;;  %v425_v9 = vshll.u32 %v422_v28, 16  ;;  %v172_v31 = vsub.s32 4294967266, %v167_v34  ;;  %v427_v50 = vshll.u32 %v1692_v29, 16 }
  0x54   :  { %v444_v58 = vmul.u32 %v442_v36, %v417_v41  ;;  %v53_v32 = vsub.f32 %v1696_v38, %v49_v46  ;;  %v424_v33 = vmul.u32 %v420_v20, %v418_v13  ;;  %v445_v40 = vmul.u32 %v441_v60, %v418_v13 }
  0x55   :  { %vm429_vm11 = vc.u32 %v421_v30, %v425_v9  ;;  %v431_v52 = vadd.s32 %v425_v9, %v421_v30  ;;  %v317_v56 = vsub.s32 0, %v1694_v35  ;;  %vm316_vm12 = vcmp.lt.s32.totalorder %v1694_v35, 0 }
  0x56   :  { %v152_v61 = vadd.s32 %v1561_v37, %v1575_v54  ;;  %v168_v62 = vsub.s32 32, %v167_v34  ;;  %v430_v63 = vsel %vm429_vm11, 1, %v1432_v19  ;;  %v443_v5 = vmul.u32 %v441_v60, %v417_v41 }
  0x57   :  { %v173_v7 = vadd.s32 127, %v172_v31  ;;  %vm433_vm13 = vc.u32 %v431_v52, %v427_v50  ;;  %v318_v8 = vsel %vm316_vm12, %v317_v56, %v1694_v35  ;;  %v446_v14 = vmul.u32 %v442_v36, %v418_v13 }
  0x58   :  { %v447_v18 = vshll.u32 %v444_v58, 16  ;;  %v1706_v27 = vadd.f32 4.0, %v53_v32  ;;  %v432_v0 = vadd.s32 %v430_v63, %v424_v33  ;;  %v449_v47 = vshll.u32 %v445_v40, 16 }
  0x59   :  { %v169_v20 = vshll.u32 %v1618_v10, %v167_v34  ;;  %v170_v30 = vshrl.u32 %v152_v61, %v168_v62  ;;  %v434_v9 = vsel %vm433_vm13, 1, %v1432_v19  ;;  %v174_v37 = vshll.u32 %v173_v7, 23 }
  0x5a   :  { %vm451_vm14 = vc.u32 %v443_v5, %v447_v18  ;;  %v319_v54 = vclz %v318_v8  ;;  %v453_v46 = vadd.s32 %v447_v18, %v443_v5  ;;  %v426_v31 = vshrl.u32 %v422_v28, 16 }
  0x5b   :  { %v452_v41 = vsel %vm451_vm14, 1, %v1432_v19  ;;  %v436_v50 = vadd.s32 %v434_v9, %v432_v0  ;;  %v448_v13 = vshrl.u32 %v444_v58, 16  ;;  %v526_v52 = vand.u32 2139095040, %v1706_v27 }
  0x5c   :  { %v454_v60 = vadd.s32 %v452_v41, %v446_v14  ;;  %vm455_vm15 = vc.u32 %v453_v46, %v449_v47  ;;  %v171_v56 = vor.u32 %v170_v30, %v169_v20  ;;  %v175_v10 = vor.u32 4788187, %v174_v37 }
  0x5d   :  { %v456_v36 = vsel %vm455_vm15, 1, %v1432_v19  ;;  %v1339_v34 = vadd.s32 4294967294, %v319_v54  ;;  %v450_v33 = vshrl.u32 %v445_v40, 16  ;;  %v527_v61 = vshrl.u32 %v526_v52, 23 }
  0x5e   :  { %v458_v32 = vadd.s32 %v456_v36, %v454_v60  ;;  %v384_v62 = vshrl.u32 %v2689_v49, %v1622_v12  ;;  %v428_v63 = vshrl.u32 %v1692_v29, 16  ;;  %v437_v5 = vadd.s32 %v436_v50, %v426_v31 }
  0x5f   :  { %v405_v58 = vsel %vm403_vm6, %v1652_v48, 2102212464  ;;  %v1344_v7 = vadd.s32 4294967169, %v527_v61  ;;  %v176_v8 = vand.u32 2147483647, %v175_v10  ;;  %v178_v14 = vcvt.s32.f32 %v171_v56 }
  0x60   :  { %v459_v28 = vadd.s32 %v458_v32, %v448_v13  ;;  %vm1340_vm0 = vcmp.lt.s32.totalorder %v1339_v34, 0  ;;  %v404_v40 = vsel %vm400_vm7, %v384_v62, %v1656_v42  ;;  %v406_v12 = vsel %vm402_vm8, %v1650_v44, %v405_v58 }
  0x61   :  { %v1725_v29 = vadd.s32 %v437_v5, %v428_v63  ;;  %v1727_v0 = vadd.s32 %v453_v46, %v449_v47  ;;  %v322_v20 = vsel %vm1340_vm0, 0, %v1339_v34  ;;  %v533_v30 = vadd.s32 1, %v1344_v7 }
  0x62   :  { %v460_v18 = vadd.s32 %v459_v28, %v450_v33  ;;  %v179_v48 = vmul.f32 %v178_v14, %v176_v8  ;;  %v407_v9 = vsel %vm401_vm9, %v404_v40, %v406_v12  ;;  %v327_v54 = vsub.s32 4294967266, %v322_v20 }
  0x63   :  { %vm463_vm1 = vc.u32 %v1725_v29, %v1727_v0  ;;  %vm534_vm2 = vcmp.gt.s32.totalorder %v533_v30, 0  ;;  %v461_v41 = vmul.u32 %v1672_v43, %v407_v9  ;;  %v307_v47 = vadd.s32 %v1614_v6, %v1620_v11 }
  0x64   :  { %v464_v37 = vadd.s32 1, %v460_v18  ;;  %v180_v42 = vxor.u32 2147483648, %v179_v48  ;;  %v323_v46 = vsub.s32 32, %v322_v20  ;;  %v328_v60 = vadd.s32 127, %v327_v54 }
  0x65   :  { %v535_v31 = vsel %vm534_vm2, %v533_v30, 0  ;;  %vm1739_vm4 = vcmp.le.f32.partialorder %v58_v24, 0.7853982  ;;  %v324_v36 = vshll.u32 %v1694_v35, %v322_v20  ;;  %v2680_v7 = vand.u32 2147483647, %v1706_v27 }
  0x66   :  { %v465_v44 = vsel %vm463_vm1, %v464_v37, %v460_v18  ;;  %v181_v50 = vsel %vm60_vm3, %v180_v42, %v179_v48  ;;  %v537_v43 = vand.u32 31, %v535_v31  ;;  %v325_v52 = vshrl.u32 %v307_v47, %v323_v46 }
  0x67   :  { %v466_v13 = vadd.s32 %v465_v44, %v461_v41  ;;  %v329_v56 = vshll.u32 %v328_v60, 23  ;;  %v1749_v6 = vsel %vm1739_vm4, %v1464_v21, %v181_v50  ;;  %v1767_v8 = vshrl.u32 %v535_v31, 5 }
  0x68   :  { %v1751_v10 = vsub.s32 32, %v537_v43  ;;  %v1755_v24 = vmul.f32 %v1749_v6, %v1749_v6  ;;  %v326_v34 = vor.u32 %v325_v52, %v324_v36  ;;  %v549_v35 = vshll.u32 %v2687_v55, %v537_v43 }
  0x69   :  { %v467_v11 = vadd.s32 536870912, %v466_v13  ;;  %v330_v32 = vor.u32 4788187, %v329_v56  ;;  %v552_v63 = vshll.u32 %v2696_v57, %v537_v43  ;;  %v540_v18 = vshll.u32 %v2689_v49, %v537_v43 }
  0x6a   :  { %v187_v33 = vmul.f32 -0.001358992, %v1755_v24  ;;  %v550_v62 = vshrl.u32 %v2696_v57, %v1751_v10  ;;  %v553_v5 = vshrl.u32 %v2695_v2, %v1751_v10  ;;  %v333_v58 = vcvt.s32.f32 %v326_v34 }
  0x6b   :  { %v1758_v61 = vshrl.u32 %v467_v11, 30  ;;  %v331_v28 = vand.u32 2147483647, %v330_v32  ;;  %v194_v14 = vmul.f32 -0.00019511016, %v1755_v24  ;;  %v543_v40 = vshll.u32 %v2685_v51, %v537_v43 }
  0x6c   :  { %v678_v12 = vmul.f32 6.0, %v1447_v3  ;;  %v541_v20 = vshrl.u32 %v2685_v51, %v1751_v10  ;;  %v544_v30 = vshrl.u32 %v2683_v53, %v1751_v10  ;;  %v546_v48 = vshll.u32 %v2683_v53, %v537_v43 }
  0x6d   :  { %v547_v9 = vshrl.u32 %v2687_v55, %v1751_v10  ;;  %v469_v37 = vshll.u32 %v1758_v61, 30  ;;  %v551_v54 = vor.u32 %v550_v62, %v549_v35  ;;  %v554_v42 = vor.u32 %v553_v5, %v552_v63 }
  0x6e   :  { %v182_v41 = vsub.s32 4, %v1604_v39  ;;  %v334_v44 = vmul.f32 %v333_v58, %v331_v28  ;;  %v530_v3 = vand.u32 8388607, %v2680_v7  ;;  %vm558_vm5 = vcmp.lt.s32.totalorder %v1767_v8, 4 }
  0x6f   :  { %v188_v47 = vadd.f32 0.041655596, %v187_v33  ;;  %v195_v46 = vadd.f32 0.008332121, %v194_v14  ;;  %v682_v60 = vsub.f32 %v1455_v15, %v678_v12  ;;  %v1786_v31 = vor.u32 %v541_v20, %v540_v18 }
  0x70   :  { %v1788_v50 = vor.u32 %v544_v30, %v543_v40  ;;  %v548_v43 = vor.u32 %v547_v9, %v546_v48  ;;  %vm555_vm6 = vcmp.lt.s32.totalorder %v1767_v8, 1  ;;  %v1791_v36 = vsub.s32 %v466_v13, %v469_v37 }
  0x71   :  { %vm557_vm7 = vcmp.lt.s32.totalorder %v1767_v8, 3  ;;  %v564_v52 = vsel %vm558_vm5, %v551_v54, 920167782  ;;  %v568_v56 = vsel %vm558_vm5, %v554_v42, 1326507024  ;;  %v183_v15 = vsel %vm60_vm3, %v182_v41, %v1604_v39 }
  0x72   :  { %v335_v11 = vxor.u32 2147483648, %v334_v44  ;;  %v531_v34 = vor.u32 8388608, %v530_v3  ;;  %v189_v32 = vmul.f32 %v188_v47, %v1755_v24  ;;  %v196_v33 = vmul.f32 %v195_v46, %v1755_v24 }
  0x73   :  { %vm215_vm8 = vcmp.lt.s32.totalorder %v1466_v22, 0  ;;  %vm556_vm9 = vcmp.lt.s32.totalorder %v1767_v8, 2  ;;  %v563_v13 = vsel %vm555_vm6, %v1786_v31, %v1788_v50  ;;  %v565_v35 = vsel %vm557_vm7, %v548_v43, %v564_v52 }
  0x74   :  { %v567_v39 = vsel %vm555_vm6, %v1788_v50, %v548_v43  ;;  %v569_v62 = vsel %vm557_vm7, %v551_v54, %v568_v56  ;;  %v185_v63 = vsel %vm1739_vm4, 0, %v183_v15  ;;  %vm1820_vm10 = vcmp.le.f32.partialorder %v213_v26, 0.7853982 }
  0x75   :  { %v472_v28 = vsub.s32 0, %v1791_v36  ;;  %v1825_v58 = vadd.f32 9.0, %v682_v60  ;;  %v336_v14 = vsel %vm215_vm8, %v335_v11, %v334_v44  ;;  %v337_v18 = vsub.s32 4, %v1662_v45 }
  0x76   :  { %vm471_vm11 = vcmp.lt.s32.totalorder %v1791_v36, 0  ;;  %v1831_v40 = vshll.u32 %v531_v34, 8  ;;  %v190_v25 = vadd.f32 -0.4999988, %v189_v32  ;;  %v197_v12 = vadd.f32 -0.16666654, %v196_v33 }
  0x77   :  { %v1835_v26 = vsel %vm556_vm9, %v563_v13, %v565_v35  ;;  %v570_v20 = vsel %vm556_vm9, %v567_v39, %v569_v62  ;;  %v1842_v30 = vsel %vm1820_vm10, %v1466_v22, %v336_v14  ;;  %v473_v48 = vsel %vm471_vm11, %v472_v28, %v1791_v36 }
  0x78   :  { %v693_v9 = vand.u32 2139095040, %v1825_v58  ;;  %v202_v37 = vadd.s32 3, %v185_v63  ;;  %v572_v54 = vand.u32 65535, %v1831_v40  ;;  %v575_v42 = vshrl.u32 %v570_v20, 16 }
  0x79   :  { %v597_v41 = vshrl.u32 %v1835_v26, 16  ;;  %v191_v44 = vmul.f32 %v190_v25, %v1755_v24  ;;  %v198_v3 = vmul.f32 %v197_v12, %v1755_v24  ;;  %v1853_v47 = vsel %vm215_vm8, %v337_v18, %v1662_v45 }
  0x7a   :  { %v694_v46 = vshrl.u32 %v693_v9, 23  ;;  %v1857_v60 = vmul.f32 %v1842_v30, %v1842_v30  ;;  %v474_v52 = vclz %v473_v48  ;;  %v679_v56 = vmul.f32 6.0, %v1449_v4 }
  0x7b   :  { %v573_v15 = vshrl.u32 %v1831_v40, 16  ;;  %v574_v11 = vand.u32 65535, %v570_v20  ;;  %v596_v34 = vand.u32 65535, %v1835_v26  ;;  %v1862_v24 = vand.u32 3, %v202_v37 }
  0x7c   :  { %v1347_v32 = vadd.s32 4294967169, %v694_v46  ;;  %v1867_v33 = vmul.u32 %v575_v42, %v572_v54  ;;  %v1869_v13 = vmul.u32 %v597_v41, %v572_v54  ;;  %v1871_v35 = vadd.f32 1.0, %v191_v44 }
  0x7d   :  { %v1873_v39 = vadd.f32 1.0, %v198_v3  ;;  %v342_v4 = vmul.f32 -0.001358992, %v1857_v60  ;;  %v1342_v63 = vadd.s32 4294967294, %v474_v52  ;;  %v539_v28 = vshrl.u32 %v2689_v49, %v1751_v10 }
  0x7e   :  { %v700_v62 = vadd.s32 1, %v1347_v32  ;;  %v560_v14 = vsel %vm558_vm5, %v548_v43, 2102212464  ;;  %v683_v18 = vsub.f32 %v1457_v16, %v679_v56  ;;  %v576_v25 = vmul.u32 %v574_v11, %v572_v54 }
  0x7f   :  { %v1881_v12 = vmul.u32 %v574_v11, %v573_v15  ;;  %v598_v26 = vmul.u32 %v596_v34, %v572_v54  ;;  %v580_v20 = vshll.u32 %v1867_v33, 16  ;;  %v602_v48 = vshll.u32 %v1869_v13, 16 }
  0x80   :  { %vm701_vm12 = vcmp.gt.s32.totalorder %v700_v62, 0  ;;  %v2681_v9 = vand.u32 2147483647, %v1825_v58  ;;  %v1886_v44 = vadd.f32 0.041655596, %v342_v4  ;;  %v1893_v16 = vadd.s32 %v1727_v0, %v1725_v29 }
  0x81   :  { %v702_v37 = vsel %vm701_vm12, %v700_v62, 0  ;;  %v1889_v10 = vmul.f32 -0.00019511016, %v1857_v60  ;;  %vm1343_vm13 = vcmp.lt.s32.totalorder %v1342_v63, 0  ;;  %v1898_v54 = vsel %vm555_vm6, %v539_v28, %v1786_v31 }
  0x82   :  { %v704_v43 = vand.u32 31, %v702_v37  ;;  %v1903_v3 = vsel %vm557_vm7, %v1788_v50, %v560_v14  ;;  %v1905_v46 = vadd.f32 9.0, %v683_v18  ;;  %v579_v52 = vmul.u32 %v575_v42, %v573_v15 }
  0x83   :  { %v582_v56 = vshll.u32 %v1881_v12, 16  ;;  %v1908_v11 = vmul.u32 %v596_v34, %v573_v15  ;;  %vm1912_vm14 = vc.u32 %v576_v25, %v580_v20  ;;  %v586_v31 = vadd.s32 %v580_v20, %v576_v25 }
  0x84   :  { %v1910_v29 = vsub.s32 32, %v704_v43  ;;  %vm1916_vm15 = vc.u32 %v598_v26, %v602_v48  ;;  %v697_v50 = vand.u32 8388607, %v2681_v9  ;;  %v707_v42 = vshll.u32 %v2689_v49, %v704_v43 }
  0x85   :  { %v710_v4 = vshll.u32 %v2685_v51, %v704_v43  ;;  %v713_v28 = vshll.u32 %v2683_v53, %v704_v43  ;;  %v716_v18 = vshll.u32 %v2687_v55, %v704_v43  ;;  %v848_v25 = vand.u32 2139095040, %v1905_v46 }
  0x86   :  { %v708_v34 = vshrl.u32 %v2685_v51, %v1910_v29  ;;  %v711_v62 = vshrl.u32 %v2683_v53, %v1910_v29  ;;  %v714_v14 = vshrl.u32 %v2687_v55, %v1910_v29  ;;  %v1934_v7 = vadd.s32 %v602_v48, %v598_v26 }
  0x87   :  { %v1936_v9 = vshrl.u32 %v702_v37, 5  ;;  %v717_v59 = vshrl.u32 %v2696_v57, %v1910_v29  ;;  %v585_v45 = vsel %vm1912_vm14, 1, %v1432_v19  ;;  %v601_v53 = vmul.u32 %v597_v41, %v573_v15 }
  0x88   :  { %v607_v51 = vsel %vm1916_vm15, 1, %v1432_v19  ;;  %v698_v55 = vor.u32 8388608, %v697_v50  ;;  %v1946_v49 = vor.u32 %v708_v34, %v707_v42  ;;  %v1948_v20 = vor.u32 %v711_v62, %v710_v4 }
  0x89   :  { %v719_v26 = vshll.u32 %v2696_v57, %v704_v43  ;;  %v720_v48 = vshrl.u32 %v2695_v2, %v1910_v29  ;;  %vm588_vm0 = vc.u32 %v586_v31, %v582_v56  ;;  %v1953_v37 = vor.u32 %v714_v14, %v713_v28 }
  0x8a   :  { %v718_v0 = vor.u32 %v717_v59, %v716_v18  ;;  %v849_v22 = vshrl.u32 %v848_v25, 23  ;;  %v1956_v41 = vsel %vm1343_vm13, 0, %v1342_v63  ;;  %v2710_v15 = vshll.u32 %v1908_v11, 16 }
  0x8b   :  { %v721_v32 = vor.u32 %v720_v48, %v719_v26  ;;  %vm722_vm2 = vcmp.lt.s32.totalorder %v1936_v9, 1  ;;  %v587_v50 = vadd.s32 %v585_v45, %v579_v52  ;;  %v609_v43 = vadd.s32 %v607_v51, %v601_v53 }
  0x8c   :  { %vm610_vm1 = vc.u32 %v1934_v7, %v2710_v15  ;;  %vm724_vm3 = vcmp.lt.s32.totalorder %v1936_v9, 3  ;;  %vm725_vm4 = vcmp.lt.s32.totalorder %v1936_v9, 4  ;;  %v589_v56 = vsel %vm588_vm0, 1, %v1432_v19 }
  0x8d   :  { %vm723_vm5 = vcmp.lt.s32.totalorder %v1936_v9, 2  ;;  %v730_v59 = vsel %vm722_vm2, %v1946_v49, %v1948_v20  ;;  %v1970_v63 = vshll.u32 %v698_v55, 8  ;;  %v611_v31 = vsel %vm610_vm1, 1, %v1432_v19 }
  0x8e   :  { %v731_v51 = vsel %vm725_vm4, %v718_v0, 920167782  ;;  %v734_v53 = vsel %vm722_vm2, %v1948_v20, %v1953_v37  ;;  %v1350_v45 = vadd.s32 4294967169, %v849_v22  ;;  %v478_v52 = vsub.s32 32, %v1956_v41 }
  0x8f   :  { %v581_v42 = vshrl.u32 %v1867_v33, 16  ;;  %v732_v55 = vsel %vm724_vm3, %v1953_v37, %v731_v51  ;;  %v735_v34 = vsel %vm725_vm4, %v721_v32, 1326507024  ;;  %v591_v4 = vadd.s32 %v589_v56, %v587_v50 }
  0x90   :  { %v603_v62 = vshrl.u32 %v1869_v13, 16  ;;  %v733_v28 = vsel %vm723_vm5, %v730_v59, %v732_v55  ;;  %v736_v22 = vsel %vm724_vm3, %v718_v0, %v735_v34  ;;  %v613_v14 = vadd.s32 %v611_v31, %v609_v43 }
  0x91   :  { %v737_v33 = vsel %vm723_vm5, %v734_v53, %v736_v22  ;;  %v739_v18 = vand.u32 65535, %v1970_v63  ;;  %v740_v25 = vshrl.u32 %v1970_v63, 16  ;;  %v763_v15 = vand.u32 65535, %v733_v28 }
  0x92   :  { %v741_v26 = vand.u32 65535, %v737_v33  ;;  %v742_v48 = vshrl.u32 %v737_v33, 16  ;;  %v855_v32 = vadd.s32 1, %v1350_v45  ;;  %v1996_v13 = vadd.f32 0.008332121, %v1889_v10 }
  0x93   :  { %v482_v50 = vsub.s32 4294967266, %v1956_v41  ;;  %v2003_v0 = vsel %vm556_vm9, %v1898_v54, %v1903_v3  ;;  %v764_v43 = vshrl.u32 %v733_v28, 16  ;;  %v479_v56 = vshll.u32 %v1791_v36, %v1956_v41 }
  0x94   :  { %v480_v59 = vshrl.u32 %v1893_v16, %v478_v52  ;;  %v583_v31 = vshrl.u32 %v1881_v12, 16  ;;  %v592_v51 = vadd.s32 %v591_v4, %v581_v42  ;;  %v605_v10 = vshrl.u32 %v1908_v11, 16 }
  0x95   :  { %v614_v53 = vadd.s32 %v613_v14, %v603_v62  ;;  %v744_v45 = vmul.u32 %v742_v48, %v739_v18  ;;  %v745_v55 = vmul.u32 %v741_v26, %v740_v25  ;;  %v743_v34 = vmul.u32 %v741_v26, %v739_v18 }
  0x96   :  { %v766_v22 = vmul.u32 %v764_v43, %v739_v18  ;;  %v767_v33 = vmul.u32 %v763_v15, %v740_v25  ;;  %vm856_vm6 = vcmp.gt.s32.totalorder %v855_v32, 0  ;;  %v483_v8 = vadd.s32 127, %v482_v50 }
  0x97   :  { %v2711_v54 = vshll.u32 %v1908_v11, 16  ;;  %v2712_v36 = vmov 683565275   ;;  %v765_v12 = vmul.u32 %v763_v15, %v739_v18  ;;  %v2017_v41 = vadd.s32 %v592_v51, %v583_v31 }
  0x98   :  { %v706_v16 = vshrl.u32 %v2712_v36, %v1910_v29  ;;  %v746_v52 = vmul.u32 %v742_v48, %v740_v25  ;;  %v747_v42 = vshll.u32 %v744_v45, 16  ;;  %v749_v4 = vshll.u32 %v745_v55, 16 }
  0x99   :  { %v2013_v3 = vadd.s32 %v1934_v7, %v2711_v54  ;;  %v615_v62 = vadd.s32 %v614_v53, %v605_v10  ;;  %v768_v28 = vmul.u32 %v764_v43, %v740_v25  ;;  %v769_v14 = vshll.u32 %v766_v22, 16 }
  0x9a   :  { %v857_v26 = vsel %vm856_vm6, %v855_v32, 0  ;;  %v727_v11 = vsel %vm725_vm4, %v1953_v37, 2102212464  ;;  %vm751_vm7 = vc.u32 %v743_v34, %v747_v42  ;;  %v753_v7 = vadd.s32 %v747_v42, %v743_v34 }
  0x9b   :  { %v771_v50 = vshll.u32 %v767_v33, 16  ;;  %v726_v29 = vsel %vm722_vm2, %v706_v16, %v1946_v49  ;;  %v748_v18 = vshrl.u32 %v744_v45, 16  ;;  %v752_v48 = vsel %vm751_vm7, 1, %v1432_v19 }
  0x9c   :  { %vm773_vm8 = vc.u32 %v765_v12, %v769_v14  ;;  %v754_v15 = vadd.s32 %v752_v48, %v746_v52  ;;  %vm755_vm9 = vc.u32 %v753_v7, %v749_v4  ;;  %v775_v32 = vadd.s32 %v769_v14, %v765_v12 }
  0x9d   :  { %v774_v25 = vsel %vm773_vm8, 1, %v1432_v19  ;;  %v728_v37 = vsel %vm724_vm3, %v1948_v20, %v727_v11  ;;  %v750_v43 = vshrl.u32 %v745_v55, 16  ;;  %v756_v31 = vsel %vm755_vm9, 1, %v1432_v19 }
  0x9e   :  { %v776_v51 = vadd.s32 %v774_v25, %v768_v28  ;;  %v758_v10 = vadd.s32 %v756_v31, %v754_v15  ;;  %v770_v53 = vshrl.u32 %v766_v22, 16  ;;  %vm777_vm11 = vc.u32 %v775_v32, %v771_v50 }
  0x9f   :  { %v859_v49 = vand.u32 31, %v857_v26  ;;  %v481_v45 = vor.u32 %v480_v59, %v479_v56  ;;  %v484_v34 = vshll.u32 %v483_v8, 23  ;;  %v778_v54 = vsel %vm777_vm11, 1, %v1432_v19 }
  0xa0   :  { %v2693_v16 = vand.u32 2147483647, %v1905_v46  ;;  %v759_v52 = vadd.s32 %v758_v10, %v748_v18  ;;  %v772_v12 = vshrl.u32 %v767_v33, 16  ;;  %v780_v42 = vadd.s32 %v778_v54, %v776_v51 }
  0xa1   :  { %v2033_v4 = vsub.s32 32, %v859_v49  ;;  %vm618_vm12 = vc.u32 %v2017_v41, %v2013_v3  ;;  %v619_v20 = vadd.s32 1, %v615_v62  ;;  %v729_v55 = vsel %vm723_vm5, %v726_v29, %v728_v37 }
  0xa2   :  { %v2039_v22 = vadd.s32 %v775_v32, %v771_v50  ;;  %v2041_v56 = vadd.s32 %v759_v52, %v750_v43  ;;  %v781_v59 = vadd.s32 %v780_v42, %v770_v53  ;;  %v2043_v8 = vshrl.u32 %v857_v26, 5 }
  0xa3   :  { %v2713_v28 = vmov 2102212464   ;;  %v862_v33 = vshll.u32 %v2712_v36, %v859_v49  ;;  %v2714_v11 = vmov 2475754826   ;;  %v2715_v48 = vmov 2131351028  }
  0xa4   :  { %v871_v14 = vshll.u32 %v2713_v28, %v859_v49  ;;  %v863_v7 = vshrl.u32 %v2714_v11, %v2033_v4  ;;  %v865_v18 = vshll.u32 %v2714_v11, %v859_v49  ;;  %v866_v9 = vshrl.u32 %v2715_v48, %v2033_v4 }
  0xa5   :  { %v782_v29 = vadd.s32 %v781_v59, %v772_v12  ;;  %v868_v50 = vshll.u32 %v2715_v48, %v859_v49  ;;  %v869_v15 = vshrl.u32 %v2713_v28, %v2033_v4  ;;  %v872_v26 = vshrl.u32 %v2696_v57, %v2033_v4 }
  0xa6   :  { %v485_v25 = vor.u32 4788187, %v484_v34  ;;  %v616_v32 = vmul.u32 %v1831_v40, %v2003_v0  ;;  %v783_v37 = vmul.u32 %v1970_v63, %v729_v55  ;;  %vm785_vm13 = vc.u32 %v2041_v56, %v2039_v22 }
  0xa7   :  { %v786_v43 = vadd.s32 1, %v782_v29  ;;  %v852_v31 = vand.u32 8388607, %v2693_v16  ;;  %v873_v51 = vor.u32 %v872_v26, %v871_v14  ;;  %v874_v10 = vshll.u32 %v2696_v57, %v859_v49 }
  0xa8   :  { %v620_v53 = vsel %vm618_vm12, %v619_v20, %v615_v62  ;;  %v2068_v34 = vor.u32 %v863_v7, %v862_v33  ;;  %v2070_v54 = vor.u32 %v866_v9, %v865_v18  ;;  %v875_v40 = vshrl.u32 %v2695_v2, %v2033_v4 }
  0xa9   :  { %v787_v63 = vsel %vm785_vm13, %v786_v43, %v782_v29  ;;  %v2074_v0 = vor.u32 %v869_v15, %v868_v50  ;;  %vm877_vm14 = vcmp.lt.s32.totalorder %v2043_v8, 1  ;;  %vm880_vm15 = vcmp.lt.s32.totalorder %v2043_v8, 4 }
  0xaa   :  { %v486_v52 = vand.u32 2147483647, %v485_v25  ;;  %v488_v49 = vcvt.s32.f32 %v481_v45  ;;  %v788_v12 = vadd.s32 %v787_v63, %v783_v37  ;;  %vm879_vm0 = vcmp.lt.s32.totalorder %v2043_v8, 3 }
  0xab   :  { %v2079_v62 = vadd.s32 %v620_v53, %v616_v32  ;;  %v853_v42 = vor.u32 8388608, %v852_v31  ;;  %v876_v20 = vor.u32 %v875_v40, %v874_v10  ;;  %v886_v55 = vsel %vm880_vm15, %v873_v51, 920167782 }
  0xac   :  { %v351_v59 = vmul.f32 %v1996_v13, %v1857_v60  ;;  %v789_v14 = vadd.s32 536870912, %v788_v12  ;;  %vm878_vm1 = vcmp.lt.s32.totalorder %v2043_v8, 2  ;;  %v885_v45 = vsel %vm877_vm14, %v2068_v34, %v2070_v54 }
  0xad   :  { %vm208_vm2 = vcmp.eq.s32.totalorder %v1862_v24, 2  ;;  %vm370_vm3 = vcmp.lt.s32.totalorder %v1468_v23, 0  ;;  %v887_v33 = vsel %vm879_vm0, %v2074_v0, %v886_v55  ;;  %v890_v7 = vsel %vm880_vm15, %v876_v20, 1326507024 }
  0xae   :  { %v2716_v13 = vsel %vm1820_vm10, 0, %v1853_v47  ;;  %v489_v9 = vmul.f32 %v488_v49, %v486_v52  ;;  %v2101_v29 = vshrl.u32 %v789_v14, 30  ;;  %v889_v50 = vsel %vm877_vm14, %v2070_v54, %v2074_v0  ;;  %v1370_v49 = vld [vmem:[#allocation2 + $0x30] sm:$0xff] }
  0xaf   :  { %v357_v18 = vadd.s32 3, %v2716_v13  ;;  %v622_v15 = vadd.s32 536870912, %v2079_v62  ;;  %v888_v26 = vsel %vm878_vm1, %v885_v45, %v887_v33  ;;  %v891_v25 = vsel %vm879_vm0, %v873_v51, %v890_v7 }
  0xb0   :  { %v2112_v5 = vshll.u32 %v853_v42, 8  ;;  %v2116_v47 = vmul.f32 %v1873_v39, %v1749_v6  ;;  %v209_v32 = vxor.u32 2147483648, %v1871_v35  ;;  %v344_v37 = vmul.f32 %v1886_v44, %v1857_v60 }
  0xb1   :  { %v352_v43 = vadd.f32 -0.16666654, %v351_v59  ;;  %v2717_v31 = vand.u32 2147483647, %v1468_v23  ;;  %v892_v51 = vsel %vm878_vm1, %v889_v50, %v891_v25  ;;  %v2131_v39 = vand.u32 3, %v357_v18 }
  0xb2   :  { %v894_v53 = vand.u32 65535, %v2112_v5  ;;  %v895_v6 = vshrl.u32 %v2112_v5, 16  ;;  %v490_v40 = vxor.u32 2147483648, %v489_v9  ;;  %v791_v63 = vshll.u32 %v2101_v29, 30 }
  0xb3   :  { %vm2123_vm10 = vcmp.le.f32.partialorder %v2717_v31, 0.7853982  ;;  %v919_v44 = vshrl.u32 %v888_v26, 16  ;;  %v2134_v52 = vshrl.u32 %v622_v15, 30  ;;  %v680_v42 = vmul.f32 6.0, %v1370_v49 }
  0xb4   :  { %v896_v20 = vand.u32 65535, %v892_v51  ;;  %v897_v55 = vshrl.u32 %v892_v51, 16  ;;  %v206_v59 = vxor.u32 2147483648, %v2116_v47  ;;  %v2140_v14 = vsel %vm208_vm2, %v209_v32, %v2116_v47 }
  0xb5   :  { %2720 = vst [vmem:[#allocation9_spill] sm:$0xff] %v2134_v52  ;;  %v345_v45 = vadd.f32 -0.4999988, %v344_v37  ;;  %v353_v33 = vmul.f32 %v352_v43, %v1857_v60  ;;  %v918_v50 = vand.u32 65535, %v888_v26  ;;  %v491_v15 = vsel %vm370_vm3, %v490_v40, %v489_v9 }
  0xb6   :  { %v898_v7 = vmul.u32 %v896_v20, %v894_v53  ;;  %v899_v13 = vmul.u32 %v897_v55, %v894_v53  ;;  %v2143_v18 = vmul.u32 %v896_v20, %v895_v6  ;;  %v2148_v25 = vmul.f32 6.0, %v1674_v1 }
  0xb7   :  { %v2150_v31 = vsub.s32 %v788_v12, %v791_v63  ;;  %v2152_v51 = vmul.u32 %v919_v44, %v894_v53  ;;  %v624_v32 = vshll.u32 %v2134_v52, 30  ;;  %v684_v37 = vsub.f32 %v1459_v17, %v680_v42 }
  0xb8   :  { %v901_v43 = vmul.u32 %v897_v55, %v895_v6  ;;  %v902_v49 = vshll.u32 %v899_v13, 16  ;;  %v346_v20 = vmul.f32 %v345_v45, %v1857_v60  ;;  %v354_v16 = vadd.f32 1.0, %v353_v33 }
  0xb9   :  { %v492_v26 = vsub.s32 4, %v1758_v61  ;;  %v904_v9 = vshll.u32 %v2143_v18, 16  ;;  %v2162_v1 = vsel %vm2123_vm10, %v1468_v23, %v491_v15  ;;  %v920_v40 = vmul.u32 %v918_v50, %v894_v53 }
  0xba   :  { %vm906_vm4 = vc.u32 %v898_v7, %v902_v49  ;;  %v908_v12 = vadd.s32 %v902_v49, %v898_v7  ;;  %vm205_vm5 = vcmp.eq.s32.totalorder %v1862_v24, 0  ;;  %v794_v17 = vsub.s32 0, %v2150_v31 }
  0xbb   :  { %v907_v63 = vsel %vm906_vm4, 1, %v1432_v19  ;;  %v922_v60 = vmul.u32 %v918_v50, %v895_v6  ;;  %v924_v42 = vshll.u32 %v2152_v51, 16  ;;  %v2169_v55 = vsub.s32 %v2079_v62, %v624_v32 }
  0xbc   :  { %vm793_vm6 = vcmp.lt.s32.totalorder %v2150_v31, 0  ;;  %v909_v45 = vadd.s32 %v907_v63, %v901_v43  ;;  %vm910_vm7 = vc.u32 %v908_v12, %v904_v9  ;;  %v2172_v33 = vadd.f32 1.0, %v346_v20 }
  0xbd   :  { %v2174_v7 = vadd.f32 9.0, %v684_v37  ;;  %v911_v53 = vsel %vm910_vm7, 1, %v1432_v19  ;;  %v923_v15 = vmul.u32 %v919_v44, %v895_v6  ;;  %v2180_v50 = vsel %vm370_vm3, %v492_v26, %v1758_v61 }
  0xbe   :  { %v2184_v62 = vmul.f32 %v2162_v1, %v2162_v1  ;;  %v903_v32 = vshrl.u32 %v899_v13, 16  ;;  %v913_v49 = vadd.s32 %v911_v53, %v909_v45  ;;  %v2187_v43 = vmul.f32 %v354_v16, %v1842_v30 }
  0xbf   :  { %v795_v37 = vsel %vm793_vm6, %v794_v17, %v2150_v31  ;;  %v926_v20 = vshll.u32 %v922_v60, 16  ;;  %vm928_vm8 = vc.u32 %v920_v40, %v924_v42  ;;  %v627_v44 = vsub.s32 0, %v2169_v55 }
  0xc0   :  { %v497_v6 = vmul.f32 -0.001358992, %v2184_v62  ;;  %v861_v61 = vshrl.u32 %v2712_v36, %v2033_v4  ;;  %v929_v26 = vsel %vm928_vm8, 1, %v1432_v19  ;;  %vm204_vm9 = vcmp.lt.s32.totalorder %v1862_v24, 2 }
  0xc1   :  { %v882_v30 = vsel %vm880_vm15, %v2074_v0, 2102212464  ;;  %v930_v16 = vadd.s32 %v924_v42, %v920_v40  ;;  %v931_v13 = vadd.s32 %v929_v26, %v923_v15  ;;  %v1003_v9 = vand.u32 2139095040, %v2174_v7 }
  0xc2   :  { %vm363_vm11 = vcmp.eq.s32.totalorder %v2131_v39, 2  ;;  %vm626_vm12 = vcmp.lt.s32.totalorder %v2169_v55, 0  ;;  %v796_v12 = vclz %v795_v37  ;;  %v905_v17 = vshrl.u32 %v2143_v18, 16 }
  0xc3   :  { %v914_v4 = vadd.s32 %v913_v49, %v903_v32  ;;  %vm360_vm13 = vcmp.eq.s32.totalorder %v2131_v39, 0  ;;  %v504_v63 = vmul.f32 -0.00019511016, %v2184_v62  ;;  %v925_v45 = vshrl.u32 %v2152_v51, 16 }
  0xc4   :  { %vm932_vm2 = vc.u32 %v930_v16, %v926_v20  ;;  %v1004_v0 = vshrl.u32 %v1003_v9, 23  ;;  %v498_v40 = vadd.f32 0.041655596, %v497_v6  ;;  %v881_v42 = vsel %vm877_vm14, %v861_v61, %v2068_v34 }
  0xc5   :  { %v883_v53 = vsel %vm879_vm0, %v2070_v54, %v882_v30  ;;  %v933_v18 = vsel %vm932_vm2, 1, %v1432_v19  ;;  %v628_v15 = vsel %vm626_vm12, %v627_v44, %v2169_v55  ;;  %v927_v32 = vshrl.u32 %v922_v60, 16 }
  0xc6   :  { %v935_v49 = vadd.s32 %v933_v18, %v931_v13  ;;  %v1353_v37 = vadd.s32 4294967169, %v1004_v0  ;;  %v207_v51 = vsel %vm205_vm5, %v1871_v35, %v206_v59  ;;  %v1348_v6 = vadd.s32 4294967294, %v796_v12 }
  0xc7   :  { %v2219_v26 = vadd.s32 %v914_v4, %v905_v17  ;;  %v2221_v34 = vadd.s32 %v930_v16, %v926_v20  ;;  %v505_v61 = vadd.f32 0.008332121, %v504_v63  ;;  %v884_v54 = vsel %vm878_vm1, %v881_v42, %v883_v53 }
  0xc8   :  { %v936_v30 = vadd.s32 %v935_v49, %v925_v45  ;;  %v1010_v44 = vadd.s32 1, %v1353_v37  ;;  %v364_v60 = vxor.u32 2147483648, %v2172_v33  ;;  %v495_v47 = vsel %vm2123_vm10, 0, %v2180_v50 }
  0xc9   :  { %v629_v13 = vclz %v628_v15  ;;  %v685_v35 = vsub.f32 %v1696_v38, %v2148_v25  ;;  %v361_v59 = vxor.u32 2147483648, %v2187_v43  ;;  %v499_v20 = vmul.f32 %v498_v40, %v2184_v62 }
  0xca   :  { %v937_v16 = vadd.s32 %v936_v30, %v927_v32  ;;  %vm1011_vm14 = vcmp.gt.s32.totalorder %v1010_v44, 0  ;;  %vm1349_vm15 = vcmp.lt.s32.totalorder %v1348_v6, 0  ;;  %v938_v8 = vmul.u32 %v2112_v5, %v884_v54 }
  0xcb   :  { %vm940_vm0 = vc.u32 %v2219_v26, %v2221_v34  ;;  %v1012_v9 = vsel %vm1011_vm14, %v1010_v44, 0  ;;  %v506_v10 = vmul.f32 %v505_v61, %v2184_v62  ;;  %v2694_v12 = vand.u32 2147483647, %v2174_v7 }
  0xcc   :  { %v941_v50 = vadd.s32 1, %v937_v16  ;;  %v1014_v17 = vand.u32 31, %v1012_v9  ;;  %v2241_v38 = vsel %vm204_vm9, %v207_v51, %v2140_v14  ;;  %v1345_v25 = vadd.s32 4294967294, %v629_v13 }
  0xcd   :  { %v2246_v5 = vsel %vm363_vm11, %v364_v60, %v2187_v43  ;;  %v799_v4 = vsel %vm1349_vm15, 0, %v1348_v6  ;;  %v2253_v0 = vsel %vm360_vm13, %v2172_v33, %v361_v59  ;;  %v2255_v40 = vadd.s32 3, %v495_v47 }
  0xce   :  { %v942_v63 = vsel %vm940_vm0, %v941_v50, %v937_v16  ;;  %v2248_v45 = vsub.s32 32, %v1014_v17  ;;  %v2257_v24 = vadd.f32 9.0, %v685_v35  ;;  %v500_v42 = vadd.f32 -0.4999988, %v499_v20 }
  0xcf   :  { %v943_v14 = vadd.s32 %v942_v63, %v938_v8  ;;  %v507_v53 = vadd.f32 -0.16666654, %v506_v10  ;;  %v2261_v43 = vadd.s32 %v2013_v3, %v2017_v41  ;;  %v1007_v18 = vand.u32 8388607, %v2694_v12 }
  0xd0   :  { %vm1346_vm1 = vcmp.lt.s32.totalorder %v1345_v25, 0  ;;  %v784_v15 = vadd.s32 %v2039_v22, %v2041_v56  ;;  %v804_v33 = vsub.s32 4294967266, %v799_v4  ;;  %v1020_v49 = vshll.u32 %v2714_v11, %v1014_v17 }
  0xd1   :  { %v944_v32 = vadd.s32 536870912, %v943_v14  ;;  %v1021_v37 = vshrl.u32 %v2715_v48, %v2248_v45  ;;  %v1023_v51 = vshll.u32 %v2715_v48, %v1014_v17  ;;  %v1024_v3 = vshrl.u32 %v2713_v28, %v2248_v45 }
  0xd2   :  { %v800_v41 = vsub.s32 32, %v799_v4  ;;  %v2275_v61 = vshrl.u32 %v1012_v9, 5  ;;  %v1029_v54 = vshll.u32 %v2696_v57, %v1014_v17  ;;  %v1008_v22 = vor.u32 8388608, %v1007_v18 }
  0xd3   :  { %v2273_v6 = vshrl.u32 %v944_v32, 30  ;;  %v1026_v56 = vshll.u32 %v2713_v28, %v1014_v17  ;;  %v1027_v30 = vshrl.u32 %v2696_v57, %v2248_v45  ;;  %v1030_v44 = vshrl.u32 %v2695_v2, %v2248_v45 }
  0xd4   :  { %v501_v60 = vmul.f32 %v500_v42, %v2184_v62  ;;  %v2285_v47 = vsel %vm1346_vm1, 0, %v1345_v25  ;;  %v805_v13 = vadd.s32 127, %v804_v33  ;;  %v1017_v59 = vshll.u32 %v2712_v36, %v1014_v17 }
  0xd5   :  { %v946_v35 = vshll.u32 %v2273_v6, 30  ;;  %v2289_v20 = vor.u32 %v1021_v37, %v1020_v49  ;;  %v2291_v16 = vor.u32 %v1024_v3, %v1023_v51  ;;  %v1031_v8 = vor.u32 %v1030_v44, %v1029_v54 }
  0xd6   :  { %v1018_v10 = vshrl.u32 %v2714_v11, %v2248_v45  ;;  %vm1032_vm3 = vcmp.lt.s32.totalorder %v2275_v61, 1  ;;  %vm1035_vm10 = vcmp.lt.s32.totalorder %v2275_v61, 4  ;;  %v801_v50 = vshll.u32 %v2150_v31, %v799_v4 }
  0xd7   :  { %v2293_v9 = vsub.s32 %v943_v14, %v946_v35  ;;  %v802_v25 = vshrl.u32 %v784_v15, %v800_v41  ;;  %v1028_v63 = vor.u32 %v1027_v30, %v1026_v56  ;;  %v2300_v42 = vshll.u32 %v1008_v22, 8 }
  0xd8   :  { %v806_v17 = vshll.u32 %v805_v13, 23  ;;  %vm1034_vm5 = vcmp.lt.s32.totalorder %v2275_v61, 3  ;;  %vm1033_vm6 = vcmp.lt.s32.totalorder %v2275_v61, 2  ;;  %v1044_v14 = vsel %vm1032_vm3, %v2289_v20, %v2291_v16 }
  0xd9   :  { %vm948_vm4 = vcmp.lt.s32.totalorder %v2293_v9, 0  ;;  %v949_v18 = vsub.s32 0, %v2293_v9  ;;  %v1045_v31 = vsel %vm1035_vm10, %v1031_v8, 1326507024  ;;  %v1158_v4 = vand.u32 2139095040, %v2257_v24 }
  0xda   :  { %v508_v15 = vmul.f32 %v507_v53, %v2184_v62  ;;  %v637_v33 = vsub.s32 4294967266, %v2285_v47  ;;  %v2316_v49 = vor.u32 %v1018_v10, %v1017_v59  ;;  %v1041_v51 = vsel %vm1035_vm10, %v1028_v63, 920167782 }
  0xdb   :  { %v950_v32 = vsel %vm948_vm4, %v949_v18, %v2293_v9  ;;  %v1046_v3 = vsel %vm1034_vm5, %v1028_v63, %v1045_v31  ;;  %v1049_v41 = vand.u32 65535, %v2300_v42  ;;  %v803_v54 = vor.u32 %v802_v25, %v801_v50 }
  0xdc   :  { %v951_v37 = vclz %v950_v32  ;;  %v807_v22 = vor.u32 4788187, %v806_v17  ;;  %v1047_v62 = vsel %vm1033_vm6, %v1044_v14, %v1046_v3  ;;  %v1050_v53 = vshrl.u32 %v2300_v42, 16 }
  0xdd   :  { %v1051_v30 = vand.u32 65535, %v1047_v62  ;;  %v1052_v44 = vshrl.u32 %v1047_v62, 16  ;;  %v1159_v13 = vshrl.u32 %v1158_v4, 23  ;;  %v633_v35 = vsub.s32 32, %v2285_v47 }
  0xde   :  { %v1351_v56 = vadd.s32 4294967294, %v951_v37  ;;  %v2327_v59 = vadd.s32 127, %v637_v33  ;;  %v1040_v8 = vsel %vm1032_vm3, %v2316_v49, %v2289_v20  ;;  %v1042_v10 = vsel %vm1034_vm5, %v2291_v16, %v1041_v51 }
  0xdf   :  { %v2336_v50 = vadd.f32 1.0, %v501_v60  ;;  %v2338_v25 = vadd.f32 1.0, %v508_v15  ;;  %v1054_v63 = vmul.u32 %v1052_v44, %v1049_v41  ;;  %v808_v17 = vand.u32 2147483647, %v807_v22 }
  0xe0   :  { %vm1352_vm7 = vcmp.lt.s32.totalorder %v1351_v56, 0  ;;  %v810_v18 = vcvt.s32.f32 %v803_v54  ;;  %v1055_v31 = vmul.u32 %v1051_v30, %v1050_v53  ;;  %v1043_v33 = vsel %vm1033_vm6, %v1040_v8, %v1042_v10 }
  0xe1   :  { %v954_v14 = vsel %vm1352_vm7, 0, %v1351_v56  ;;  %v1053_v32 = vmul.u32 %v1051_v30, %v1049_v41  ;;  %v1356_v37 = vadd.s32 4294967169, %v1159_v13  ;;  %v2345_v60 = vshrl.u32 %v2261_v43, %v633_v35 }
  0xe2   :  { %v959_v4 = vsub.s32 4294967266, %v954_v14  ;;  %v1073_v51 = vand.u32 65535, %v1043_v33  ;;  %v939_v54 = vadd.s32 %v2221_v34, %v2219_v26  ;;  %v955_v22 = vsub.s32 32, %v954_v14 }
  0xe3   :  { %v1056_v62 = vmul.u32 %v1052_v44, %v1050_v53  ;;  %v1057_v56 = vshll.u32 %v1054_v63, 16  ;;  %v2350_v12 = vmul.f32 %v810_v18, %v808_v17  ;;  %v1059_v30 = vshll.u32 %v1055_v31, 16 }
  0xe4   :  { %v960_v8 = vadd.s32 127, %v959_v4  ;;  %v1074_v13 = vshrl.u32 %v1043_v33, 16  ;;  %v956_v10 = vshll.u32 %v2293_v9, %v954_v14  ;;  %v1165_v43 = vadd.s32 1, %v1356_v37 }
  0xe5   :  { %vm1061_vm8 = vc.u32 %v1053_v32, %v1057_v56  ;;  %v1063_v3 = vadd.s32 %v1057_v56, %v1053_v32  ;;  %v1075_v15 = vmul.u32 %v1073_v51, %v1049_v41  ;;  %v1077_v57 = vmul.u32 %v1073_v51, %v1050_v53 }
  0xe6   :  { %v1062_v35 = vsel %vm1061_vm8, 1, %v1432_v19  ;;  %v1076_v2 = vmul.u32 %v1074_v13, %v1049_v41  ;;  %v957_v52 = vshrl.u32 %v939_v54, %v955_v22  ;;  %v1058_v26 = vshrl.u32 %v1054_v63, 16 }
  0xe7   :  { %v1064_v34 = vadd.s32 %v1062_v35, %v1056_v62  ;;  %vm1065_vm9 = vc.u32 %v1063_v3, %v1059_v30  ;;  %v961_v44 = vshll.u32 %v960_v8, 23  ;;  %v1078_v18 = vmul.u32 %v1074_v13, %v1050_v53 }
  0xe8   :  { %v1066_v17 = vsel %vm1065_vm9, 1, %v1432_v19  ;;  %v1079_v4 = vshll.u32 %v1076_v2, 16  ;;  %v1016_v9 = vshrl.u32 %v2712_v36, %v2248_v45  ;;  %v1037_v14 = vsel %vm1035_vm10, %v2291_v16, 2102212464 }
  0xe9   :  { %v1068_v33 = vadd.s32 %v1066_v17, %v1064_v34  ;;  %v1081_v32 = vshll.u32 %v1077_v57, 16  ;;  %v1060_v41 = vshrl.u32 %v1055_v31, 16  ;;  %vm1166_vm12 = vcmp.gt.s32.totalorder %v1165_v43, 0 }
  0xea   :  { %vm1083_vm11 = vc.u32 %v1075_v15, %v1079_v4  ;;  %v1085_v37 = vadd.s32 %v1079_v4, %v1075_v15  ;;  %v958_v63 = vor.u32 %v957_v52, %v956_v10  ;;  %v1167_v54 = vsel %vm1166_vm12, %v1165_v43, 0 }
  0xeb   :  { %v1069_v3 = vadd.s32 %v1068_v33, %v1058_v26  ;;  %v1084_v51 = vsel %vm1083_vm11, 1, %v1432_v19  ;;  %v962_v53 = vor.u32 4788187, %v961_v44  ;;  %v1080_v22 = vshrl.u32 %v1076_v2, 16 }
  0xec   :  { %v1086_v62 = vadd.s32 %v1084_v51, %v1078_v18  ;;  %vm1087_vm13 = vc.u32 %v1085_v37, %v1081_v32  ;;  %v2721_v45 = vand.u32 2147483647, %v1825_v58  ;;  %v1036_v16 = vsel %vm1032_vm3, %v1016_v9, %v2316_v49 }
  0xed   :  { %v1038_v52 = vsel %vm1034_vm5, %v2289_v20, %v1037_v14  ;;  %v1088_v31 = vsel %vm1087_vm13, 1, %v1432_v19  ;;  %v1169_v15 = vand.u32 31, %v1167_v54  ;;  %vm692_vm14 = vcmp.lt.s32.totalorder %v1825_v58, 0 }
  0xee   :  { %vm2363_vm2 = vcmp.le.f32.partialorder %v2721_v45, 0.7853982  ;;  %v1082_v2 = vshrl.u32 %v1077_v57, 16  ;;  %v1090_v8 = vadd.s32 %v1088_v31, %v1086_v62  ;;  %v2700_v30 = vand.u32 2147483647, %v2257_v24 }
  0xef   :  { %v812_v13 = vxor.u32 2147483648, %v2350_v12  ;;  %v2377_v10 = vadd.s32 %v1069_v3, %v1060_v41  ;;  %v2379_v43 = vadd.s32 %v1085_v37, %v1081_v32  ;;  %v2381_v49 = vsub.s32 32, %v1169_v15 }
  0xf0   :  { %v963_v35 = vand.u32 2147483647, %v962_v53  ;;  %v965_v26 = vcvt.s32.f32 %v958_v63  ;;  %v1039_v20 = vsel %vm1033_vm6, %v1036_v16, %v1038_v52  ;;  %v1091_v34 = vadd.s32 %v1090_v8, %v1080_v22 }
  0xf1   :  { %v1172_v44 = vshll.u32 %v2712_v36, %v1169_v15  ;;  %v1173_v57 = vshrl.u32 %v2714_v11, %v2381_v49  ;;  %v1175_v17 = vshll.u32 %v2714_v11, %v1169_v15  ;;  %v1176_v18 = vshrl.u32 %v2715_v48, %v2381_v49 }
  0xf2   :  { %vm359_vm15 = vcmp.lt.s32.totalorder %v2131_v39, 2  ;;  %v1092_v4 = vadd.s32 %v1091_v34, %v1082_v2  ;;  %v1162_v9 = vand.u32 8388607, %v2700_v30  ;;  %v2394_v14 = vshrl.u32 %v1167_v54, 5 }
  0xf3   :  { %v1181_v61 = vshll.u32 %v2713_v28, %v1169_v15  ;;  %v1093_v33 = vmul.u32 %v2300_v42, %v1039_v20  ;;  %vm1095_vm0 = vc.u32 %v2377_v10, %v2379_v43  ;;  %v1178_v11 = vshll.u32 %v2715_v48, %v1169_v15 }
  0xf4   :  { %v1179_v32 = vshrl.u32 %v2713_v28, %v2381_v49  ;;  %v966_v41 = vmul.f32 %v965_v26, %v963_v35  ;;  %v1096_v37 = vadd.s32 1, %v1092_v4  ;;  %v2724_v63 = vmov 920167782  }
  0xf5   :  { %v1182_v3 = vshrl.u32 %v2724_v63, %v2381_v49  ;;  %v1184_v51 = vshll.u32 %v2724_v63, %v1169_v15  ;;  %v813_v54 = vsel %vm692_vm14, %v812_v13, %v2350_v12  ;;  %v2409_v42 = vor.u32 %v1173_v57, %v1172_v44 }
  0xf6   :  { %v2411_v53 = vor.u32 %v1176_v18, %v1175_v17  ;;  %v2725_v48 = vmov 1326507024   ;;  %v1097_v62 = vsel %vm1095_vm0, %v1096_v37, %v1092_v4  ;;  %v1163_v28 = vor.u32 8388608, %v1162_v9 }
  0xf7   :  { %v1185_v22 = vshrl.u32 %v2725_v48, %v2381_v49  ;;  %v1183_v45 = vor.u32 %v1182_v3, %v1181_v61  ;;  %vm1187_vm1 = vcmp.lt.s32.totalorder %v2394_v14, 1  ;;  %v2726_v16 = vshll.u32 %v2327_v59, 23 }
  0xf8   :  { %v1098_v31 = vadd.s32 %v1097_v62, %v1093_v33  ;;  %v2418_v15 = vor.u32 %v1179_v32, %v1178_v11  ;;  %vm1190_vm3 = vcmp.lt.s32.totalorder %v2394_v14, 4  ;;  %v2424_v12 = vsel %vm2363_vm2, %v1825_v58, %v813_v54 }
  0xf9   :  { %v640_v52 = vor.u32 4788187, %v2726_v16  ;;  %v967_v2 = vxor.u32 2147483648, %v966_v41  ;;  %v1186_v8 = vor.u32 %v1185_v22, %v1184_v51  ;;  %vm1189_vm10 = vcmp.lt.s32.totalorder %v2394_v14, 3 }
  0xfa   :  { %vm847_vm4 = vcmp.lt.s32.totalorder %v1905_v46, 0  ;;  %v1099_v13 = vadd.s32 536870912, %v1098_v31  ;;  %vm1188_vm5 = vcmp.lt.s32.totalorder %v2394_v14, 2  ;;  %v1195_v59 = vsel %vm1187_vm1, %v2409_v42, %v2411_v53 }
  0xfb   :  { %v2727_v35 = vshll.u32 %v2169_v55, %v2285_v47  ;;  %v1196_v20 = vsel %vm1190_vm3, %v1183_v45, 920167782  ;;  %v1200_v34 = vsel %vm1190_vm3, %v1186_v8, 1326507024  ;;  %v2441_v44 = vshll.u32 %v1163_v28, 8 }
  0xfc   :  { %v2445_v57 = vmul.f32 %v2424_v12, %v2424_v12  ;;  %v2447_v17 = vshrl.u32 %v1099_v13, 30  ;;  %v1197_v55 = vsel %vm1189_vm10, %v2418_v15, %v1196_v20  ;;  %v1199_v47 = vsel %vm1187_vm1, %v2411_v53, %v2418_v15 }
  0xfd   :  { %v636_v26 = vor.u32 %v2345_v60, %v2727_v35  ;;  %v2728_v60 = vand.u32 2147483647, %v1905_v46  ;;  %v968_v4 = vsel %vm847_vm4, %v967_v2, %v966_v41  ;;  %v1198_v9 = vsel %vm1188_vm5, %v1195_v59, %v1197_v55 }
  0xfe   :  { %v1201_v61 = vsel %vm1189_vm10, %v1183_v45, %v1200_v34  ;;  %v2472_v33 = vsel %vm359_vm15, %v2253_v0, %v2246_v5  ;;  %v2475_v11 = vand.u32 3, %v2255_v40  ;;  %v819_v32 = vmul.f32 -0.001358992, %v2445_v57 }
  0xff   :  { %vm2458_vm6 = vcmp.le.f32.partialorder %v2728_v60, 0.7853982  ;;  %v1101_v37 = vshll.u32 %v2447_v17, 30  ;;  %v643_v41 = vcvt.s32.f32 %v636_v26  ;;  %v1202_v63 = vsel %vm1188_vm5, %v1199_v47, %v1201_v61 }
 0x100   :  { %v1204_v3 = vand.u32 65535, %v2441_v44  ;;  %v1205_v51 = vshrl.u32 %v2441_v44, 16  ;;  %v641_v54 = vand.u32 2147483647, %v640_v52  ;;  %v2486_v39 = vsel %vm2458_vm6, %v1905_v46, %v968_v4 }
 0x101   :  { %v1102_v5 = vsub.s32 %v1098_v31, %v1101_v37  ;;  %v1229_v0 = vshrl.u32 %v1198_v9, 16  ;;  %v2490_v40 = vmul.f32 %v2338_v25, %v2162_v1  ;;  %v1206_v22 = vand.u32 65535, %v1202_v63 }
 0x102   :  { %v1207_v62 = vshrl.u32 %v1202_v63, 16  ;;  %v820_v28 = vadd.f32 0.041655596, %v819_v32  ;;  %v826_v45 = vmul.f32 -0.00019511016, %v2445_v57  ;;  %v2496_v52 = vmul.f32 %v2486_v39, %v2486_v39 }
 0x103   :  { %vm1103_vm7 = vcmp.lt.s32.totalorder %v1102_v5, 0  ;;  %v1104_v16 = vsub.s32 0, %v1102_v5  ;;  %v1208_v2 = vmul.u32 %v1206_v22, %v1204_v3  ;;  %v2498_v8 = vmul.u32 %v1206_v22, %v1205_v51 }
 0x104   :  { %v1209_v31 = vmul.u32 %v1207_v62, %v1204_v3  ;;  %v2500_v13 = vmul.f32 %v643_v41, %v641_v54  ;;  %v1228_v25 = vand.u32 65535, %v1198_v9  ;;  %v2502_v59 = vmul.u32 %v1229_v0, %v1204_v3 }
 0x105   :  { %v1105_v1 = vsel %vm1103_vm7, %v1104_v16, %v1102_v5  ;;  %v814_v35 = vsub.s32 4, %v2101_v29  ;;  %v1211_v20 = vmul.u32 %v1207_v62, %v1205_v51  ;;  %v2506_v55 = vmul.f32 %v820_v28, %v2445_v57 }
 0x106   :  { %v1106_v26 = vclz %v1105_v1  ;;  %v1212_v34 = vshll.u32 %v1209_v31, 16  ;;  %v827_v47 = vadd.f32 0.008332121, %v826_v45  ;;  %v1094_v60 = vadd.s32 %v2379_v43, %v2377_v10 }
 0x107   :  { %v1214_v4 = vshll.u32 %v2498_v8, 16  ;;  %v981_v61 = vmul.f32 -0.00019511016, %v2496_v52  ;;  %v1230_v41 = vmul.u32 %v1228_v25, %v1204_v3  ;;  %v1232_v63 = vmul.u32 %v1228_v25, %v1205_v51 }
 0x108   :  { %v1354_v32 = vadd.s32 4294967294, %v1106_v26  ;;  %vm1216_vm8 = vc.u32 %v1208_v2, %v1212_v34  ;;  %v1218_v9 = vadd.s32 %v1212_v34, %v1208_v2  ;;  %v1234_v54 = vshll.u32 %v2502_v59, 16 }
 0x109   :  { %v1217_v37 = vsel %vm1216_vm8, 1, %v1432_v19  ;;  %v974_v22 = vmul.f32 -0.001358992, %v2496_v52  ;;  %v1213_v10 = vshrl.u32 %v1209_v31, 16  ;;  %v1233_v45 = vmul.u32 %v1229_v0, %v1205_v51 }
 0x10a   :  { %vm1355_vm9 = vcmp.lt.s32.totalorder %v1354_v32, 0  ;;  %v1219_v62 = vadd.s32 %v1217_v37, %v1211_v20  ;;  %vm1220_vm11 = vc.u32 %v1218_v9, %v1214_v4  ;;  %v982_v34 = vadd.f32 0.008332121, %v981_v61 }
 0x10b   :  { %v1109_v28 = vsel %vm1355_vm9, 0, %v1354_v32  ;;  %v1221_v43 = vsel %vm1220_vm11, 1, %v1432_v19  ;;  %v1171_v3 = vshrl.u32 %v2712_v36, %v2381_v49  ;;  %v1236_v25 = vshll.u32 %v1232_v63, 16 }
 0x10c   :  { %v1110_v16 = vsub.s32 32, %v1109_v28  ;;  %v1111_v1 = vshll.u32 %v1102_v5, %v1109_v28  ;;  %v1114_v26 = vsub.s32 4294967266, %v1109_v28  ;;  %v1223_v2 = vadd.s32 %v1221_v43, %v1219_v62 }
 0x10d   :  { %vm1238_vm12 = vc.u32 %v1230_v41, %v1234_v54  ;;  %v828_v30 = vmul.f32 %v827_v47, %v2445_v57  ;;  %vm525_vm13 = vcmp.lt.s32.totalorder %v1706_v27, 0  ;;  %v975_v31 = vadd.f32 0.041655596, %v974_v22 }
 0x10e   :  { %v1112_v48 = vshrl.u32 %v1094_v60, %v1110_v16  ;;  %v1115_v20 = vadd.s32 127, %v1114_v26  ;;  %v1239_v4 = vsel %vm1238_vm12, 1, %v1432_v19  ;;  %v1192_v51 = vsel %vm1190_vm3, %v2418_v15, 2102212464 }
 0x10f   :  { %v1240_v5 = vadd.s32 %v1234_v54, %v1230_v41  ;;  %v1241_v0 = vadd.s32 %v1239_v4, %v1233_v45  ;;  %v1215_v36 = vshrl.u32 %v2498_v8, 16  ;;  %v1224_v49 = vadd.s32 %v1223_v2, %v1213_v10 }
 0x110   :  { %v1113_v61 = vor.u32 %v1112_v48, %v1111_v1  ;;  %v1116_v32 = vshll.u32 %v1115_v20, 23  ;;  %v983_v47 = vmul.f32 %v982_v34, %v2496_v52  ;;  %v1191_v60 = vsel %vm1187_vm1, %v1171_v3, %v2409_v42 }
 0x111   :  { %v1235_v9 = vshrl.u32 %v2502_v59, 16  ;;  %vm1242_vm15 = vc.u32 %v1240_v5, %v1236_v25  ;;  %v1193_v15 = vsel %vm1189_vm10, %v2411_v53, %v1192_v51  ;;  %v815_v8 = vsel %vm692_vm14, %v814_v35, %v2101_v29 }
 0x112   :  { %v1117_v37 = vor.u32 4788187, %v1116_v32  ;;  %v1120_v22 = vcvt.s32.f32 %v1113_v61  ;;  %v1243_v48 = vsel %vm1242_vm15, 1, %v1432_v19  ;;  %v969_v41 = vsub.s32 4, %v2273_v6 }
 0x113   :  { %v1237_v54 = vshrl.u32 %v1232_v63, 16  ;;  %v1245_v62 = vadd.s32 %v1243_v48, %v1241_v0  ;;  %vm515_vm0 = vcmp.eq.s32.totalorder %v2475_v11, 0  ;;  %v2731_v42 = vand.u32 2147483647, %v1706_v27 }
 0x114   :  { %v829_v28 = vadd.f32 -0.16666654, %v828_v30  ;;  %v1118_v53 = vand.u32 2147483647, %v1117_v37  ;;  %v2545_v10 = vadd.s32 %v1224_v49, %v1215_v36  ;;  %v2547_v19 = vadd.s32 %v1240_v5, %v1236_v25 }
 0x115   :  { %vm2541_vm1 = vcmp.le.f32.partialorder %v2731_v42, 0.7853982  ;;  %v976_v29 = vmul.f32 %v975_v31, %v2496_v52  ;;  %v984_v35 = vadd.f32 -0.16666654, %v983_v47  ;;  %v1194_v63 = vsel %vm1188_vm5, %v1191_v60, %v1193_v15 }
 0x116   :  { %v1246_v43 = vadd.s32 %v1245_v62, %v1235_v9  ;;  %v645_v45 = vxor.u32 2147483648, %v2500_v13  ;;  %v817_v16 = vsel %vm2363_vm2, 0, %v815_v8  ;;  %v822_v1 = vadd.f32 -0.4999988, %v2506_v55 }
 0x117   :  { %v1121_v30 = vmul.f32 %v1120_v22, %v1118_v53  ;;  %vm514_vm14 = vcmp.lt.s32.totalorder %v2475_v11, 2  ;;  %v970_v26 = vsel %vm847_vm4, %v969_v41, %v2273_v6  ;;  %vm1002_vm3 = vcmp.lt.s32.totalorder %v2174_v7, 0 }
 0x118   :  { %v1124_v14 = vsub.s32 4, %v2447_v17  ;;  %v1247_v2 = vadd.s32 %v1246_v43, %v1237_v54  ;;  %v2734_v34 = vand.u32 2147483647, %v2174_v7  ;;  %v1248_v55 = vmul.u32 %v2441_v44, %v1194_v63 }
 0x119   :  { %v1122_v56 = vxor.u32 2147483648, %v1121_v30  ;;  %vm1250_vm2 = vc.u32 %v2545_v10, %v2547_v19  ;;  %v830_v25 = vmul.f32 %v829_v28, %v2445_v57  ;;  %v977_v6 = vadd.f32 -0.4999988, %v976_v29 }
 0x11a   :  { %vm2564_vm10 = vcmp.le.f32.partialorder %v2734_v34, 0.7853982  ;;  %v985_v20 = vmul.f32 %v984_v35, %v2496_v52  ;;  %v1251_v4 = vadd.s32 1, %v1247_v2  ;;  %v516_v31 = vxor.u32 2147483648, %v2490_v40 }
 0x11b   :  { %vm518_vm4 = vcmp.eq.s32.totalorder %v2475_v11, 2  ;;  %v646_v51 = vsel %vm525_vm13, %v645_v45, %v2500_v13  ;;  %v1123_v44 = vsel %vm1002_vm3, %v1122_v56, %v1121_v30  ;;  %v834_v5 = vadd.s32 3, %v817_v16  ;;  %v2738_v11 = vld [vmem:[#allocation8_spill] sm:$0xff] }
 0x11c   :  { %v1125_v0 = vsel %vm1002_vm3, %v1124_v14, %v2447_v17  ;;  %v2586_v61 = vsel %vm2564_vm10, %v2174_v7, %v1123_v44  ;;  %v1252_v32 = vsel %vm1250_vm2, %v1251_v4, %v1247_v2  ;;  %v823_v36 = vmul.f32 %v822_v1, %v2445_v57 }
 0x11d   :  { %v972_v49 = vsel %vm2458_vm6, 0, %v970_v26  ;;  %v1128_v13 = vmul.f32 %v2586_v61, %v2586_v61  ;;  %v1253_v47 = vadd.s32 %v1252_v32, %v1248_v55  ;;  %v2737_v60 = vxor.u32 2147483648, %v2336_v50 }
 0x11e   :  { %v831_v17 = vadd.f32 1.0, %v830_v25  ;;  %v978_v37 = vmul.f32 %v977_v6, %v2496_v52  ;;  %v986_v22 = vadd.f32 1.0, %v985_v20  ;;  %v1127_v15 = vsel %vm2564_vm10, 0, %v1125_v0 }
 0x11f   :  { %v520_v9 = vsel %vm518_vm4, %v2737_v60, %v2490_v40  ;;  %v1129_v48 = vmul.f32 -0.001358992, %v1128_v13  ;;  %v1136_v57 = vmul.f32 -0.00019511016, %v1128_v13  ;;  %v1254_v8 = vadd.s32 536870912, %v1253_v47 }
 0x120   :  { %v517_v18 = vsel %vm515_vm0, %v2336_v50, %v516_v31  ;;  %v2605_v41 = vsel %vm2541_vm1, %v1706_v27, %v646_v51  ;;  %v835_v40 = vand.u32 3, %v834_v5  ;;  %v989_v54 = vadd.s32 3, %v972_v49 }
 0x121   :  { %v824_v62 = vadd.f32 1.0, %v823_v36  ;;  %v1130_v52 = vadd.f32 0.041655596, %v1129_v48  ;;  %v1137_v42 = vadd.f32 0.008332121, %v1136_v57  ;;  %v2607_v28 = vshrl.u32 %v1254_v8, 30 }
 0x122   :  { %v832_v53 = vmul.f32 %v831_v17, %v2424_v12  ;;  %v979_v29 = vadd.f32 1.0, %v978_v37  ;;  %v987_v35 = vmul.f32 %v986_v22, %v2486_v39  ;;  %v1144_v63 = vadd.s32 3, %v1127_v15 }
 0x123   :  { %v2613_v50 = vsel %vm514_vm14, %v517_v18, %v520_v9  ;;  %v1131_v43 = vmul.f32 %v1130_v52, %v1128_v13  ;;  %v1138_v45 = vmul.f32 %v1137_v42, %v1128_v13  ;;  %v1256_v16 = vshll.u32 %v2607_v28, 30 }
 0x124   :  { %v2618_v1 = vmul.f32 %v2605_v41, %v2605_v41  ;;  %vm837_vm5 = vcmp.eq.s32.totalorder %v835_v40, 0  ;;  %vm840_vm6 = vcmp.eq.s32.totalorder %v835_v40, 2  ;;  %v990_v30 = vand.u32 3, %v989_v54 }
 0x125   :  { %v841_v12 = vxor.u32 2147483648, %v824_v62  ;;  %v1132_v26 = vadd.f32 -0.4999988, %v1131_v43  ;;  %v1139_v14 = vadd.f32 -0.16666654, %v1138_v45  ;;  %v1257_v39 = vsub.s32 %v1253_v47, %v1256_v16 }
 0x126   :  { %vm201_vm7 = vweird.f32 %v1464_v21  ;;  %vm356_vm8 = vweird.f32 %v2738_v11  ;;  %v838_v2 = vxor.u32 2147483648, %v832_v53  ;;  %v993_v34 = vxor.u32 2147483648, %v987_v35 }
 0x127   :  { %v996_v3 = vxor.u32 2147483648, %v979_v29  ;;  %v1145_v56 = vand.u32 3, %v1144_v63  ;;  %vm511_vm9 = vweird.f32 %v1468_v23  ;;  %v1133_v55 = vmul.f32 %v1132_v26, %v1128_v13 }
 0x128   :  { %v1140_v25 = vmul.f32 %v1139_v14, %v1128_v13  ;;  %vm1258_vm11 = vcmp.lt.s32.totalorder %v1257_v39, 0  ;;  %v1259_v6 = vsub.s32 0, %v1257_v39  ;;  %v659_v20 = vmul.f32 -0.00019511016, %v2618_v1 }
 0x129   :  { %vm836_vm12 = vcmp.lt.s32.totalorder %v835_v40, 2  ;;  %vm992_vm15 = vcmp.eq.s32.totalorder %v990_v30, 0  ;;  %vm995_vm0 = vcmp.eq.s32.totalorder %v990_v30, 2  ;;  %v842_v4 = vsel %vm840_vm6, %v841_v12, %v832_v53 }
 0x12a   :  { %v1134_v31 = vadd.f32 1.0, %v1133_v55  ;;  %v1141_v51 = vadd.f32 1.0, %v1140_v25  ;;  %v1260_v44 = vsel %vm1258_vm11, %v1259_v6, %v1257_v39  ;;  %v839_v5 = vsel %vm837_vm5, %v824_v62, %v838_v2 }
 0x12b   :  { %vm991_vm14 = vcmp.lt.s32.totalorder %v990_v30, 2  ;;  %vm1150_vm3 = vcmp.eq.s32.totalorder %v1145_v56, 2  ;;  %v1261_v0 = vclz %v1260_v44  ;;  %v994_v32 = vsel %vm992_vm15, %v979_v29, %v993_v34 }
 0x12c   :  { %v997_v36 = vsel %vm995_vm0, %v996_v3, %v987_v35  ;;  %v1142_v49 = vmul.f32 %v1141_v51, %v2586_v61  ;;  %v1151_v13 = vxor.u32 2147483648, %v1134_v31  ;;  %v652_v47 = vmul.f32 -0.001358992, %v2618_v1 }
 0x12d   :  { %vm833_vm10 = vweird.f32 %v1825_v58  ;;  %vm1147_vm2 = vcmp.eq.s32.totalorder %v1145_v56, 0  ;;  %v1357_v60 = vadd.s32 4294967294, %v1261_v0  ;;  %vm988_vm4 = vweird.f32 %v1905_v46  ;;  %v2739_v46 = vld [vmem:[#allocation9_spill] sm:$0xff] }
 0x12e   :  { %vm1146_vm6 = vcmp.lt.s32.totalorder %v1145_v56, 2  ;;  %v1148_v9 = vxor.u32 2147483648, %v1142_v49  ;;  %v1152_v17 = vsel %vm1150_vm3, %v1151_v13, %v1142_v49  ;;  %v843_v37 = vsel %vm836_vm12, %v839_v5, %v842_v4 }
 0x12f   :  { %v998_v22 = vsel %vm991_vm14, %v994_v32, %v997_v36  ;;  %v1249_v15 = vadd.s32 %v2547_v19, %v2545_v10  ;;  %vm1358_vm5 = vcmp.lt.s32.totalorder %v1357_v60, 0  ;;  %v660_v61 = vadd.f32 0.008332121, %v659_v20 }
 0x130   :  { %vm1143_vm11 = vweird.f32 %v2174_v7  ;;  %v1149_v48 = vsel %vm1147_vm2, %v1134_v31, %v1148_v9  ;;  %v1264_v57 = vsel %vm1358_vm5, 0, %v1357_v60  ;;  %v212_v40 = vsel %vm201_vm7, nan, %v2241_v38 }
 0x131   :  { %v1153_v8 = vsel %vm1146_vm6, %v1149_v48, %v1152_v17  ;;  %v1265_v18 = vsub.s32 32, %v1264_v57  ;;  %v1266_v54 = vshll.u32 %v1257_v39, %v1264_v57  ;;  %v1269_v62 = vsub.s32 4294967266, %v1264_v57 }
 0x132   :  { %v367_v52 = vsel %vm356_vm8, nan, %v2472_v33  ;;  %v844_v10 = vsel %vm833_vm10, nan, %v843_v37  ;;  %v999_v7 = vsel %vm988_vm4, nan, %v998_v22  ;;  %v522_v19 = vsel %vm511_vm9, nan, %v2613_v50 }
 0x133   :  { %v1154_v42 = vsel %vm1143_vm11, nan, %v1153_v8  ;;  %v1267_v53 = vshrl.u32 %v1249_v15, %v1265_v18  ;;  %v1270_v29 = vadd.s32 127, %v1269_v62  ;;  %v653_v35 = vadd.f32 0.041655596, %v652_v47 }
 0x134   :  { %v661_v21 = vmul.f32 %v660_v61, %v2618_v1  ;;  %v1310_v43 = vadd.f32 %v844_v10, %v212_v40  ;;  %v1311_v33 = vadd.f32 %v999_v7, %v367_v52  ;;  %v1312_v45 = vadd.f32 %v1154_v42, %v522_v19 }
 0x135   :  { %v1268_v38 = vor.u32 %v1267_v53, %v1266_v54  ;;  %v1271_v63 = vshll.u32 %v1270_v29, 23  ;;  %v647_v30 = vsub.s32 4, %v2739_v46  ;;  %v654_v23 = vmul.f32 %v653_v35, %v2618_v1 }
 0x136   :  { %1314 = vst [vmem:[#allocation5] sm:$0xff] %v1310_v43  ;;  %v662_v50 = vadd.f32 -0.16666654, %v661_v21  ;;  %vm1157_vm7 = vcmp.lt.s32.totalorder %v2257_v24, 0  ;;  %v1279_v39 = vsub.s32 4, %v2607_v28  ;;  %vm666_vm15 = vweird.f32 %v1706_v27 }
 0x137   :  { %v1272_v58 = vor.u32 4788187, %v1271_v63  ;;  %v1275_v16 = vcvt.s32.f32 %v1268_v38  ;;  %1315 = vst [vmem:[#allocation5 + $0x8] sm:$0xff] %v1311_v33  ;;  %v648_v14 = vsel %vm525_vm13, %v647_v30, %v2739_v46  ;;  %v655_v11 = vadd.f32 -0.4999988, %v654_v23 }
 0x138   :  { %1316 = vst [vmem:[#allocation5 + $0x10] sm:$0xff] %v1312_v45  ;;  %v663_v2 = vmul.f32 %v662_v50, %v2618_v1  ;;  %v2740_v34 = vand.u32 2147483647, %v2257_v24  ;;  %v650_v55 = vsel %vm2541_vm1, 0, %v648_v14  ;;  %v1280_v6 = vsel %vm1157_vm7, %v1279_v39, %v2607_v28 }
 0x139   :  { %v1273_v12 = vand.u32 2147483647, %v1272_v58  ;;  %v656_v4 = vmul.f32 %v655_v11, %v2618_v1  ;;  %v667_v44 = vadd.s32 3, %v650_v55  ;;  %vm1298_vm3 = vweird.f32 %v2257_v24 }
 0x13a   :  { %vm2659_vm8 = vcmp.le.f32.partialorder %v2740_v34, 0.7853982  ;;  %v664_v31 = vadd.f32 1.0, %v663_v2 }
 0x13b   :  { %v1276_v26 = vmul.f32 %v1275_v16, %v1273_v12  ;;  %v1282_v5 = vsel %vm2659_vm8, 0, %v1280_v6  ;;  %v657_v36 = vadd.f32 1.0, %v656_v4  ;;  %v668_v28 = vand.u32 3, %v667_v44 }
 0x13c   :  { %v665_v59 = vmul.f32 %v664_v31, %v2605_v41  ;;  %v1299_v47 = vadd.s32 3, %v1282_v5 }
 0x13d   :  { %v1277_v56 = vxor.u32 2147483648, %v1276_v26  ;;  %v674_v37 = vxor.u32 2147483648, %v657_v36  ;;  %vm670_vm13 = vcmp.eq.s32.totalorder %v668_v28, 0  ;;  %vm673_vm1 = vcmp.eq.s32.totalorder %v668_v28, 2 }
 0x13e   :  { %v671_v17 = vxor.u32 2147483648, %v665_v59  ;;  %v1300_v15 = vand.u32 3, %v1299_v47  ;;  %vm669_vm9 = vcmp.lt.s32.totalorder %v668_v28, 2 }
 0x13f   :  { %v1278_v25 = vsel %vm1157_vm7, %v1277_v56, %v1276_v26  ;;  %v675_v8 = vsel %vm673_vm1, %v674_v37, %v665_v59 }
 0x140   :  { %v1281_v20 = vsel %vm2659_vm8, %v2257_v24, %v1278_v25  ;;  %v672_v57 = vsel %vm670_vm13, %v657_v36, %v671_v17  ;;  %vm1305_vm12 = vcmp.eq.s32.totalorder %v1300_v15, 2  ;;  %vm1302_vm0 = vcmp.eq.s32.totalorder %v1300_v15, 0 }
 0x141   :  { %v1283_v51 = vmul.f32 %v1281_v20, %v1281_v20  ;;  %v676_v40 = vsel %vm669_vm9, %v672_v57, %v675_v8  ;;  %vm1301_vm14 = vcmp.lt.s32.totalorder %v1300_v15, 2 }
 0x142   :  { %v677_v7 = vsel %vm666_vm15, nan, %v676_v40 }
 0x143   :  { %v1284_v0 = vmul.f32 -0.001358992, %v1283_v51  ;;  %v1291_v32 = vmul.f32 -0.00019511016, %v1283_v51 }
 0x145   :  { %v1285_v49 = vadd.f32 0.041655596, %v1284_v0  ;;  %v1292_v13 = vadd.f32 0.008332121, %v1291_v32 }
 0x147   :  { %v1286_v60 = vmul.f32 %v1285_v49, %v1283_v51  ;;  %v1293_v9 = vmul.f32 %v1292_v13, %v1283_v51 }
 0x149   :  { %v1287_v1 = vadd.f32 -0.4999988, %v1286_v60  ;;  %v1294_v22 = vadd.f32 -0.16666654, %v1293_v9 }
 0x14b   :  { %v1288_v61 = vmul.f32 %v1287_v1, %v1283_v51  ;;  %v1295_v48 = vmul.f32 %v1294_v22, %v1283_v51 }
 0x14d   :  { %v1289_v18 = vadd.f32 1.0, %v1288_v61  ;;  %v1296_v41 = vadd.f32 1.0, %v1295_v48 }
 0x14f   :  { %v1297_v54 = vmul.f32 %v1296_v41, %v1281_v20  ;;  %v1306_v62 = vxor.u32 2147483648, %v1289_v18 }
 0x151   :  { %v1303_v52 = vxor.u32 2147483648, %v1297_v54  ;;  %v1307_v10 = vsel %vm1305_vm12, %v1306_v62, %v1297_v54 }
 0x153   :  { %v1304_v19 = vsel %vm1302_vm0, %v1289_v18, %v1303_v52 }
 0x154   :  { %v1308_v42 = vsel %vm1301_vm14, %v1304_v19, %v1307_v10 }
 0x155   :  { %v1309_v53 = vsel %vm1298_vm3, nan, %v1308_v42 }
 0x156   :  { %v1313_v29 = vadd.f32 %v1309_v53, %v677_v7 }
 0x158   :  { %1317 = vst [vmem:[#allocation5 + $0x18] sm:$0xff] %v1313_v29 }
 0x159   :  { %1328 = dma.vmem_to_hbm [thread:$0]  %s1324_s13, 512, %s1326_s16, [#allocation4]  }
 0x15a   :  { %1421 = dma.done.wait [#allocation4], 512  }
 0x15b   :  { %1422 = vsyncadd [#allocation4], 4294966784 }
 0x15c   :  { %1333 = vsyncpa [#allocation3], 1 }
 0x15d   :  { %1334 = vsyncpa [#allocation4], 1 }

</bundles_post_ra>
